<compile_context>
chip_gen: v7x
topology: tpu7x:2x2x1
jax: 0.10.0
libtpu: 0.0.40
codegen_flags: <defaults>
</compile_context>

<pallas_src>
import math

import jax
import jax.numpy as jnp
from jax.experimental import pallas as pl
from jax.experimental.pallas import tpu as pltpu


# -----------------------------------------------------------------------------
# helpers
# -----------------------------------------------------------------------------
def _pick_tile(n, target=512):
    """Largest tile <= target dividing n; prefer multiples of 128, then 8."""
    if n <= target:
        return n
    t = (target // 128) * 128
    while t >= 128:
        if n % t == 0:
            return t
        t -= 128
    t = (target // 8) * 8
    while t >= 8:
        if n % t == 0:
            return t
        t -= 8
    return n


def _vmem_limit_bytes():
    # v5e/v6e have 128 MiB physical VMEM -> 64 MiB scoped is safe headroom;
    # v7x only has 64 MiB physical -> stay at <= 48 MiB.
    try:
        kind = jax.devices()[0].device_kind.lower()
        if "v7" in kind:
            return 48 * 1024 * 1024
    except Exception:
        pass
    return 64 * 1024 * 1024


def _compiler_params(semantics):
    return pltpu.CompilerParams(
        dimension_semantics=semantics,
        vmem_limit_bytes=_vmem_limit_bytes(),
    )


def _ln_affine(x, gamma_eff, beta_eff):
    """LayerNorm with pre-folded (learned + adaptive) affine parameters."""
    mean = jnp.mean(x, axis=-1, keepdims=True)
    var = jnp.mean((x - mean) ** 2, axis=-1, keepdims=True)
    xn = (x - mean) * jax.lax.rsqrt(var + 1e-5)
    return xn * gamma_eff + beta_eff


# -----------------------------------------------------------------------------
# Kernel 1: fused [cond-LN -> multi-head self-attention -> +residual]
# -----------------------------------------------------------------------------
def _make_self_attn_block_kernel(num_heads, head_dim, tq):
    D = num_heads * head_dim
    sm_scale = 1.0 / math.sqrt(head_dim)

    def kernel(x_ref, bias_ref, gamma_ref, beta_ref,
               wq_ref, bq_ref, wkv_ref, bkv_ref, wo_ref, bo_ref,
               o_ref, kv_ref):
        i = pl.program_id(1)
        L = x_ref.shape[1]
        gamma_eff = gamma_ref[0]              # (1, D) = gamma*(1+scale(c))
        beta_eff = beta_ref[0]                # (1, D) = beta*(1+scale(c))+shift(c)

        # --- once per batch: cond-LN + fused K|V projection of full sequence ---
        @pl.when(i == 0)
        def _():
            x_full = x_ref[0]                                         # (L, D) f32
            kv_in = _ln_affine(x_full, gamma_eff, beta_eff).astype(jnp.bfloat16)
            kv_ref[...] = (jnp.dot(kv_in, wkv_ref[...],
                                   preferred_element_type=jnp.float32)
                           + bkv_ref[0]).astype(jnp.bfloat16)         # (L, 2D)

        # --- per query tile ---
        row0 = pl.multiple_of(i * tq, tq)
        x_q = x_ref[0, pl.ds(row0, tq), :]                            # raw residual rows
        q_in = _ln_affine(x_q, gamma_eff, beta_eff)
        q = (jnp.dot(q_in.astype(jnp.bfloat16), wq_ref[...],
                     preferred_element_type=jnp.float32) + bq_ref[0])
        q = (q * sm_scale).astype(jnp.bfloat16)                       # scale folded once

        kv = kv_ref[...]                                              # (L, 2D) bf16
        bias = jnp.broadcast_to(bias_ref[0], (tq, L))                 # hoisted broadcast

        heads = []
        for h in range(num_heads):                                    # static head loop
            lo = h * head_dim
            hi = lo + head_dim
            sc = jax.lax.dot_general(q[:, lo:hi], kv[:, lo:hi],
                                     (((1,), (1,)), ((), ())),
                                     preferred_element_type=jnp.float32) + bias
            m = jnp.max(sc, axis=-1, keepdims=True)
            e = jnp.exp(sc - m)
            l = jnp.sum(e, axis=-1, keepdims=True)
            oh = jnp.dot(e.astype(jnp.bfloat16), kv[:, D + lo:D + hi],
                         preferred_element_type=jnp.float32)
            heads.append((oh * pl.reciprocal(l, approx=True)).astype(jnp.bfloat16))

        # single (tq,D)@(D,D) output projection instead of H K=head_dim matmuls
        o_cat = jnp.concatenate(heads, axis=-1)
        out = jnp.dot(o_cat, wo_ref[...], preferred_element_type=jnp.float32)
        o_ref[0] = (out + bo_ref[0] + x_q).astype(o_ref.dtype)

    return kernel


def self_attn_block(x, bias, gamma_eff, beta_eff, attn_p, num_heads, q_tile=512):
    B, L, D = x.shape
    head_dim = D // num_heads
    tq = _pick_tile(L, q_tile)
    nq = L // tq
    kernel = _make_self_attn_block_kernel(num_heads, head_dim, tq)
    const2 = lambda b, i: (0, 0)
    perb3 = lambda b, i: (b, 0, 0)
    cost = pl.CostEstimate(
        flops=int(2 * B * (4 * L * D * D + 2 * L * L * D)),
        transcendentals=int(B * num_heads * L * L),
        bytes_accessed=int(2 * B * L * D * 4 + B * L * 4 + 2 * B * D * 4 + 8 * D * D),
    )
    return pl.pallas_call(
        kernel,
        out_shape=jax.ShapeDtypeStruct((B, L, D), x.dtype),
        grid=(B, nq),
        in_specs=[
            pl.BlockSpec((1, L, D), perb3),          # x (full seq: residual + K/V src)
            pl.BlockSpec((1, 1, L), perb3),          # additive key-padding bias
            pl.BlockSpec((1, 1, D), perb3),          # effective gamma (per batch)
            pl.BlockSpec((1, 1, D), perb3),          # effective beta  (per batch)
            pl.BlockSpec((D, D), const2),            # wq  (bf16)
            pl.BlockSpec((1, D), const2),            # bq
            pl.BlockSpec((D, 2 * D), const2),        # wkv (bf16, fused K|V)
            pl.BlockSpec((1, 2 * D), const2),        # bkv
            pl.BlockSpec((D, D), const2),            # wo  (bf16)
            pl.BlockSpec((1, D), const2),            # bo
        ],
        out_specs=pl.BlockSpec((1, tq, D), lambda b, i: (b, i, 0)),
        scratch_shapes=[pltpu.VMEM((L, 2 * D), jnp.bfloat16)],   # per-batch K|V cache
        compiler_params=_compiler_params(("parallel", "arbitrary")),
        cost_estimate=cost,
    )(x, bias, gamma_eff, beta_eff,
      attn_p["wq"], attn_p["bq"], attn_p["wkv"], attn_p["bkv"],
      attn_p["wo"], attn_p["bo"])


# -----------------------------------------------------------------------------
# Kernel 2: fused [cond-LN -> cross-modal attention -> +residual] (+ attn weights)
# -----------------------------------------------------------------------------
def _make_cross_attn_block_kernel(num_heads, head_dim, tq):
    D = num_heads * head_dim
    sm_scale = 1.0 / math.sqrt(head_dim)

    def kernel(x_ref, s_ref, bias_ref, gamma_ref, beta_ref,
               wq_ref, bq_ref, wkv_ref, bkv_ref, wo_ref, bo_ref,
               o_ref, w_ref, kv_ref):
        i = pl.program_id(1)
        Lk = s_ref.shape[1]

        # --- once per batch: fused K|V projection of structure features ---
        @pl.when(i == 0)
        def _():
            st = s_ref[0]                                             # (Lk, D) bf16
            kv_ref[...] = (jnp.dot(st, wkv_ref[...],
                                   preferred_element_type=jnp.float32)
                           + bkv_ref[0]).astype(jnp.bfloat16)         # (Lk, 2D)

        x_q = x_ref[0]                                                # (tq, D) residual
        xn = _ln_affine(x_q, gamma_ref[0], beta_ref[0])
        q = (jnp.dot(xn.astype(jnp.bfloat16), wq_ref[...],
                     preferred_element_type=jnp.float32) + bq_ref[0])
        q = (q * sm_scale).astype(jnp.bfloat16)

        kv = kv_ref[...]                                              # (Lk, 2D) bf16
        bias = jnp.broadcast_to(bias_ref[0], (tq, Lk))

        heads = []
        for h in range(num_heads):
            lo = h * head_dim
            hi = lo + head_dim
            sc = jax.lax.dot_general(q[:, lo:hi], kv[:, lo:hi],
                                     (((1,), (1,)), ((), ())),
                                     preferred_element_type=jnp.float32) + bias
            m = jnp.max(sc, axis=-1, keepdims=True)
            e = jnp.exp(sc - m)
            l = jnp.sum(e, axis=-1, keepdims=True)
            p = e / l                          # exact normalization: weights are returned
            w_ref[0, h] = p
            oh = jnp.dot(p.astype(jnp.bfloat16), kv[:, D + lo:D + hi],
                         preferred_element_type=jnp.float32)
            heads.append(oh.astype(jnp.bfloat16))

        o_cat = jnp.concatenate(heads, axis=-1)
        out = jnp.dot(o_cat, wo_ref[...], preferred_element_type=jnp.float32)
        o_ref[0] = (out + bo_ref[0] + x_q).astype(o_ref.dtype)

    return kernel


def cross_attn_block(x, structure, bias, gamma_eff, beta_eff, attn_p, num_heads,
                     q_tile=512):
    B, Lq, D = x.shape
    Lk = structure.shape[1]
    head_dim = D // num_heads
    tq = _pick_tile(Lq, q_tile)
    nq = Lq // tq
    structure = structure.astype(jnp.bfloat16)   # matmul operand only -> halve its DMA
    kernel = _make_cross_attn_block_kernel(num_heads, head_dim, tq)
    const2 = lambda b, i: (0, 0)
    perb3 = lambda b, i: (b, 0, 0)
    cost = pl.CostEstimate(
        flops=int(2 * B * (2 * Lk * D * D + 2 * Lq * D * D + 2 * Lq * Lk * D)),
        transcendentals=int(B * num_heads * Lq * Lk),
        bytes_accessed=int(2 * B * Lq * D * 4 + B * Lk * D * 2 + B * Lk * 4
                           + B * num_heads * Lq * Lk * 4 + 8 * D * D),
    )
    return pl.pallas_call(
        kernel,
        out_shape=(jax.ShapeDtypeStruct((B, Lq, D), x.dtype),
                   jax.ShapeDtypeStruct((B, num_heads, Lq, Lk), jnp.float32)),
        grid=(B, nq),
        in_specs=[
            pl.BlockSpec((1, tq, D), lambda b, i: (b, i, 0)),   # x query tile (residual)
            pl.BlockSpec((1, Lk, D), perb3),                    # structure feats (bf16)
            pl.BlockSpec((1, 1, Lk), perb3),                    # additive key bias
            pl.BlockSpec((1, 1, D), perb3),                     # effective gamma
            pl.BlockSpec((1, 1, D), perb3),                     # effective beta
            pl.BlockSpec((D, D), const2),                       # wq  (bf16)
            pl.BlockSpec((1, D), const2),                       # bq
            pl.BlockSpec((D, 2 * D), const2),                   # wkv (bf16)
            pl.BlockSpec((1, 2 * D), const2),                   # bkv
            pl.BlockSpec((D, D), const2),                       # wo  (bf16)
            pl.BlockSpec((1, D), const2),                       # bo
        ],
        out_specs=(pl.BlockSpec((1, tq, D), lambda b, i: (b, i, 0)),
                   pl.BlockSpec((1, num_heads, tq, Lk), lambda b, i: (b, 0, i, 0))),
        scratch_shapes=[pltpu.VMEM((Lk, 2 * D), jnp.bfloat16)],  # per-batch K|V cache
        compiler_params=_compiler_params(("parallel", "arbitrary")),
        cost_estimate=cost,
    )(x, structure, bias, gamma_eff, beta_eff,
      attn_p["wq"], attn_p["bq"], attn_p["wkv"], attn_p["bkv"],
      attn_p["wo"], attn_p["bo"])


# -----------------------------------------------------------------------------
# Kernel 3: fused [cond-LN -> gated SiLU FFN -> +residual]
# -----------------------------------------------------------------------------
def _ffn_block_kernel(x_ref, gamma_ref, beta_ref, wgu_ref, bgu_ref, wd_ref, bd_ref,
                      o_ref):
    x = x_ref[0]                                            # (tl, D) f32 residual
    I = wgu_ref.shape[1] // 2

    xn = _ln_affine(x, gamma_ref[0], beta_ref[0]).astype(jnp.bfloat16)
    gu = jnp.dot(xn, wgu_ref[...], preferred_element_type=jnp.float32) + bgu_ref[0]
    g = gu[:, :I]
    u = gu[:, I:]
    h = (g * jax.lax.logistic(g)) * u                       # silu(gate) * up
    out = jnp.dot(h.astype(jnp.bfloat16), wd_ref[...],
                  preferred_element_type=jnp.float32) + bd_ref[0]
    o_ref[0] = (out + x).astype(o_ref.dtype)


def ffn_block(x, gamma_eff, beta_eff, ffn_p, l_tile=512):
    # TODO(synk): tile the intermediate dim (I) with a pl.when-gated accumulator for
    #             v7x at large D; at test shapes the fused (D, 2I) weight is tiny.
    B, L, D = x.shape
    I = ffn_p["wd"].shape[0]
    tl = _pick_tile(L, l_tile)
    nl = L // tl
    const2 = lambda b, i: (0, 0)
    perb3 = lambda b, i: (b, 0, 0)
    cost = pl.CostEstimate(
        flops=int(6 * B * L * D * I),
        transcendentals=int(B * L * I),
        bytes_accessed=int(2 * B * L * D * 4 + 2 * B * D * 4 + 6 * D * I),
    )
    return pl.pallas_call(
        _ffn_block_kernel,
        out_shape=jax.ShapeDtypeStruct((B, L, D), x.dtype),
        grid=(B, nl),
        in_specs=[
            pl.BlockSpec((1, tl, D), lambda b, i: (b, i, 0)),   # x tile (residual)
            pl.BlockSpec((1, 1, D), perb3),                     # effective gamma
            pl.BlockSpec((1, 1, D), perb3),                     # effective beta
            pl.BlockSpec((D, 2 * I), const2),                   # wgu (bf16, gate|up)
            pl.BlockSpec((1, 2 * I), const2),                   # bgu
            pl.BlockSpec((I, D), const2),                       # wd  (bf16)
            pl.BlockSpec((1, D), const2),                       # bd
        ],
        out_specs=pl.BlockSpec((1, tl, D), lambda b, i: (b, i, 0)),
        compiler_params=_compiler_params(("parallel", "parallel")),
        cost_estimate=cost,
    )(x, gamma_eff, beta_eff, ffn_p["wgu"], ffn_p["bgu"], ffn_p["wd"], ffn_p["bd"])


# -----------------------------------------------------------------------------
# Parameter init (deterministic, synthetic; weights bf16, biases f32)
# -----------------------------------------------------------------------------
def _init_linear(key, fan_in, fan_out, dtype=jnp.bfloat16, scale=0.02):
    w = (jax.random.normal(key, (fan_in, fan_out), jnp.float32) * scale).astype(dtype)
    b = jnp.zeros((1, fan_out), jnp.float32)
    return w, b


def _init_attn(key, D):
    kq, kk, kv, ko = jax.random.split(key, 4)
    wq, bq = _init_linear(kq, D, D)
    wk, _ = _init_linear(kk, D, D)
    wv, _ = _init_linear(kv, D, D)
    wo, bo = _init_linear(ko, D, D)
    return {"wq": wq, "bq": bq,
            "wkv": jnp.concatenate([wk, wv], axis=1),       # fused K|V projection
            "bkv": jnp.zeros((1, 2 * D), jnp.float32),
            "wo": wo, "bo": bo}


def _init_ffn(key, D, I):
    kg, ku, kd = jax.random.split(key, 3)
    wg, _ = _init_linear(kg, D, I)
    wu, _ = _init_linear(ku, D, I)
    wd, bd = _init_linear(kd, I, D)
    return {"wgu": jnp.concatenate([wg, wu], axis=1),       # fused gate|up projection
            "bgu": jnp.zeros((1, 2 * I), jnp.float32),
            "wd": wd, "bd": bd}


def _init_cond_ln(key, D, cond_dim):
    k1, k2 = jax.random.split(key)
    w_s, b_s = _init_linear(k1, cond_dim, D, dtype=jnp.float32)
    w_sh, b_sh = _init_linear(k2, cond_dim, D, dtype=jnp.float32)
    return {"gamma": jnp.ones((1, D), jnp.float32),
            "beta": jnp.zeros((1, D), jnp.float32),
            "w_scale": w_s, "b_scale": b_s,
            "w_shift": w_sh, "b_shift": b_sh}


def init_denoising_block_params(key, hidden_dim, num_heads, use_cross_attention=True):
    D = hidden_dim
    I = 4 * D
    cond_dim = D // 2
    ks = jax.random.split(key, 8)
    params = {
        "self_attn": _init_attn(ks[0], D),
        "self_attn_norm": _init_cond_ln(ks[1], D, cond_dim),
        "ffn": _init_ffn(ks[2], D, I),
        "ffn_norm": _init_cond_ln(ks[3], D, cond_dim),
        "use_cross_attention": use_cross_attention,
        "num_heads": num_heads,
    }
    if use_cross_attention:
        params["cross_attn"] = _init_attn(ks[4], D)
        params["cross_attn_norm"] = _init_cond_ln(ks[5], D, cond_dim)
    return params


# -----------------------------------------------------------------------------
# Forward glue
# -----------------------------------------------------------------------------
def _effective_ln_params(ln_p, cond, batch, D):
    """Fold LayerNorm affine + AF3 adaptive modulation into per-batch gamma'/beta'.

    h = (xn*gamma + beta)*(1+scale(c)) + shift(c)
      = xn * gamma*(1+scale)  +  beta*(1+scale) + shift
    Tiny (B, cond_dim) projections: plain-JAX glue.
    """
    if cond is None:
        scale = jnp.zeros((batch, D), jnp.float32)
        shift = jnp.zeros((batch, D), jnp.float32)
    else:
        scale = cond @ ln_p["w_scale"] + ln_p["b_scale"]
        shift = cond @ ln_p["w_shift"] + ln_p["b_shift"]
    gamma_eff = ln_p["gamma"] * (1.0 + scale)
    beta_eff = ln_p["beta"] * (1.0 + scale) + shift
    return gamma_eff.reshape(batch, 1, D), beta_eff.reshape(batch, 1, D)


def denoising_block_forward(params, x, attention_mask,
                            structure_features=None, conditioning_signals=None):
    """Mirrors DenoisingBlock.forward. Dropout is inference-mode identity."""
    B, L, D = x.shape
    num_heads = params["num_heads"]
    cond = None
    if conditioning_signals is not None:
        cond = conditioning_signals.get("condition", None)

    # additive key-padding bias, (B, 1, L): 0 where valid, -1e9 where masked
    bias = ((attention_mask.astype(jnp.float32) - 1.0) * 1e9).reshape(B, 1, L)

    # --- self-attention sub-block (fused LN + MHSA + residual) ---
    g, b = _effective_ln_params(params["self_attn_norm"], cond, B, D)
    x = self_attn_block(x, bias, g, b, params["self_attn"], num_heads)

    # --- optional cross-attention sub-block ---
    cross_attn_weights = None
    if params["use_cross_attention"] and structure_features is not None:
        # TODO(synk): reference passes the x-sequence mask to cross_attn; this assumes
        #             structure_features has the same length L as x (true in the test).
        g, b = _effective_ln_params(params["cross_attn_norm"], cond, B, D)
        x, cross_attn_weights = cross_attn_block(
            x, structure_features, bias, g, b, params["cross_attn"], num_heads)

    # --- feed-forward sub-block (fused LN + gated-SiLU FFN + residual) ---
    g, b = _effective_ln_params(params["ffn_norm"], cond, B, D)
    x = ffn_block(x, g, b, params["ffn"])
    return x, cross_attn_weights


# -----------------------------------------------------------------------------
if __name__ == "__main__":
    B, L, D, H = 2, 8, 32, 4          # batch, seq, hidden, heads
    cond_dim = D // 2

    key = jax.random.PRNGKey(0)
    k_x, k_s, k_c, k_p = jax.random.split(key, 4)

    x = jax.random.normal(k_x, (B, L, D), jnp.float32)
    structure_features = jax.random.normal(k_s, (B, L, D), jnp.float32)
    cond = jax.random.normal(k_c, (B, cond_dim), jnp.float32)
    attention_mask = jnp.ones((B, L), jnp.float32).at[1, -1].set(0.0)

    params = init_denoising_block_params(k_p, D, H, use_cross_attention=True)

    out, cross_w = denoising_block_forward(
        params, x, attention_mask,
        structure_features=structure_features,
        conditioning_signals={"condition": cond})

    jax.block_until_ready((out, cross_w))
    assert out.shape == (B, L, D)
    assert cross_w.shape == (B, H, L, L)
    assert jnp.all(jnp.isfinite(out)) and jnp.all(jnp.isfinite(cross_w))
    print("KERNEL_OK")
</pallas_src>

<mosaic_0001>
module attributes {stable_mosaic.version = 11 : i64} {
  func.func @kernel(%arg0: i32, %arg1: i32, %arg2: memref<1x8x32xf32, #tpu.memory_space<vmem>>, %arg3: memref<1x1x8xf32, #tpu.memory_space<vmem>>, %arg4: memref<1x1x32xf32, #tpu.memory_space<vmem>>, %arg5: memref<1x1x32xf32, #tpu.memory_space<vmem>>, %arg6: memref<32x32xbf16, #tpu.memory_space<vmem>>, %arg7: memref<1x32xf32, #tpu.memory_space<vmem>>, %arg8: memref<32x64xbf16, #tpu.memory_space<vmem>>, %arg9: memref<1x64xf32, #tpu.memory_space<vmem>>, %arg10: memref<32x32xbf16, #tpu.memory_space<vmem>>, %arg11: memref<1x32xf32, #tpu.memory_space<vmem>>, %arg12: memref<1x8x32xf32, #tpu.memory_space<vmem>>, %arg13: memref<8x64xbf16, #tpu.memory_space<vmem>>) attributes {dimension_semantics = [#tpu.dimension_semantics<parallel>, #tpu.dimension_semantics<arbitrary>], iteration_bounds = array<i64: 2, 1>, scalar_prefetch = 0 : i64, scratch_operands = 1 : i64, tpu.core_type = #tpu.core_type<tc>, window_params = [{transform_indices = @transform_0, window_bounds = array<i64: 1, 8, 32>}, {transform_indices = @transform_1, window_bounds = array<i64: 1, 1, 8>}, {transform_indices = @transform_2, window_bounds = array<i64: 1, 1, 32>}, {transform_indices = @transform_3, window_bounds = array<i64: 1, 1, 32>}, {pipeline_mode = #tpu.pipeline_mode<synchronous>, transform_indices = @transform_4, window_bounds = array<i64: 32, 32>}, {pipeline_mode = #tpu.pipeline_mode<synchronous>, transform_indices = @transform_5, window_bounds = array<i64: 1, 32>}, {pipeline_mode = #tpu.pipeline_mode<synchronous>, transform_indices = @transform_6, window_bounds = array<i64: 32, 64>}, {pipeline_mode = #tpu.pipeline_mode<synchronous>, transform_indices = @transform_7, window_bounds = array<i64: 1, 64>}, {pipeline_mode = #tpu.pipeline_mode<synchronous>, transform_indices = @transform_8, window_bounds = array<i64: 32, 32>}, {pipeline_mode = #tpu.pipeline_mode<synchronous>, transform_indices = @transform_9, window_bounds = array<i64: 1, 32>}, {transform_indices = @transform_10, window_bounds = array<i64: 1, 8, 32>}]} {
    %c0 = arith.constant 0 : index
    %c0_0 = arith.constant 0 : index
    %c0_1 = arith.constant 0 : index
    %0 = vector.load %arg4[%c0, %c0_0, %c0_1] : memref<1x1x32xf32, #tpu.memory_space<vmem>>, vector<1x1x32xf32>
    %1 = vector.shape_cast %0 : vector<1x1x32xf32> to vector<1x32xf32>
    %c0_2 = arith.constant 0 : index
    %c0_3 = arith.constant 0 : index
    %c0_4 = arith.constant 0 : index
    %2 = vector.load %arg5[%c0_2, %c0_3, %c0_4] : memref<1x1x32xf32, #tpu.memory_space<vmem>>, vector<1x1x32xf32>
    %3 = vector.shape_cast %2 : vector<1x1x32xf32> to vector<1x32xf32>
    %c0_i32 = arith.constant 0 : i32
    %4 = arith.cmpi eq, %arg1, %c0_i32 : i32
    %5 = arith.extui %4 : i1 to i32
    %c0_i32_5 = arith.constant 0 : i32
    %6 = arith.cmpi ne, %5, %c0_i32_5 : i32
    scf.if %6 {
      %c0_47 = arith.constant 0 : index
      %c0_48 = arith.constant 0 : index
      %c0_49 = arith.constant 0 : index
      %134 = vector.load %arg2[%c0_47, %c0_48, %c0_49] : memref<1x8x32xf32, #tpu.memory_space<vmem>>, vector<1x8x32xf32>
      %135 = vector.shape_cast %134 : vector<1x8x32xf32> to vector<8x32xf32>
      %cst_50 = arith.constant dense<0.000000e+00> : vector<8xf32>
      %136 = vector.multi_reduction <add>, %135, %cst_50 [1] : vector<8x32xf32> to vector<8xf32>
      %137 = vector.shape_cast %136 : vector<8xf32> to vector<8x1xf32>
      %cst_51 = arith.constant 3.200000e+01 : f32
      %138 = vector.broadcast %cst_51 : f32 to vector<8x1xf32>
      %139 = arith.divf %137, %138 : vector<8x1xf32>
      %140 = vector.broadcast %139 : vector<8x1xf32> to vector<8x32xf32>
      %141 = arith.subf %135, %140 : vector<8x32xf32>
      %142 = arith.mulf %141, %141 : vector<8x32xf32>
      %cst_52 = arith.constant dense<0.000000e+00> : vector<8xf32>
      %143 = vector.multi_reduction <add>, %142, %cst_52 [1] : vector<8x32xf32> to vector<8xf32>
      %144 = vector.shape_cast %143 : vector<8xf32> to vector<8x1xf32>
      %cst_53 = arith.constant 3.200000e+01 : f32
      %145 = vector.broadcast %cst_53 : f32 to vector<8x1xf32>
      %146 = arith.divf %144, %145 : vector<8x1xf32>
      %147 = vector.broadcast %139 : vector<8x1xf32> to vector<8x32xf32>
      %148 = arith.subf %135, %147 : vector<8x32xf32>
      %cst_54 = arith.constant 9.99999974E-6 : f32
      %149 = vector.broadcast %cst_54 : f32 to vector<8x1xf32>
      %150 = arith.addf %146, %149 : vector<8x1xf32>
      %151 = math.rsqrt %150 : vector<8x1xf32>
      %152 = vector.broadcast %151 : vector<8x1xf32> to vector<8x32xf32>
      %153 = arith.mulf %148, %152 : vector<8x32xf32>
      %154 = vector.broadcast %1 : vector<1x32xf32> to vector<8x32xf32>
      %155 = arith.mulf %153, %154 : vector<8x32xf32>
      %156 = vector.broadcast %3 : vector<1x32xf32> to vector<8x32xf32>
      %157 = arith.addf %155, %156 : vector<8x32xf32>
      %158 = arith.truncf %157 : vector<8x32xf32> to vector<8x32xbf16>
      %c0_55 = arith.constant 0 : index
      %c0_56 = arith.constant 0 : index
      %159 = vector.load %arg8[%c0_55, %c0_56] : memref<32x64xbf16, #tpu.memory_space<vmem>>, vector<32x64xbf16>
      %cst_57 = arith.constant dense<0.000000e+00> : vector<8x64xf32>
      %160 = tpu.matmul %158, %159, %cst_57 {dimension_numbers = #tpu.dot_dimension_numbers<[1], [0], [0], [1], [0, 0, 1, 1], [], []>} : vector<8x32xbf16>, vector<32x64xbf16>, vector<8x64xf32> -> vector<8x64xf32>
      %c0_58 = arith.constant 0 : index
      %c0_59 = arith.constant 0 : index
      %161 = vector.load %arg9[%c0_58, %c0_59] : memref<1x64xf32, #tpu.memory_space<vmem>>, vector<1x64xf32>
      %162 = vector.shape_cast %161 : vector<1x64xf32> to vector<64xf32>
      %163 = vector.shape_cast %162 : vector<64xf32> to vector<1x64xf32>
      %164 = vector.broadcast %163 : vector<1x64xf32> to vector<8x64xf32>
      %165 = arith.addf %160, %164 : vector<8x64xf32>
      %166 = arith.truncf %165 : vector<8x64xf32> to vector<8x64xbf16>
      %c0_60 = arith.constant 0 : index
      %c0_61 = arith.constant 0 : index
      %167 = vector.load %arg13[%c0_60, %c0_61] : memref<8x64xbf16, #tpu.memory_space<vmem>>, vector<8x64xbf16>
      tpu.vector_store %arg13[%c0_60, %c0_61], %166 {strides = array<i32>} : memref<8x64xbf16, #tpu.memory_space<vmem>>, vector<8x64xbf16>,
    } else {
    }
    %c8_i32 = arith.constant 8 : i32
    %7 = arith.muli %arg1, %c8_i32 : i32
    %8 = tpu.assume_multiple %7, 8 : i32
    %c0_6 = arith.constant 0 : index
    %9 = arith.index_cast %8 : i32 to index
    %c0_7 = arith.constant 0 : index
    %10 = vector.load %arg2[%c0_6, %9, %c0_7] : memref<1x8x32xf32, #tpu.memory_space<vmem>>, vector<1x8x32xf32>
    %11 = vector.shape_cast %10 : vector<1x8x32xf32> to vector<8x32xf32>
    %cst = arith.constant dense<0.000000e+00> : vector<8xf32>
    %12 = vector.multi_reduction <add>, %11, %cst [1] : vector<8x32xf32> to vector<8xf32>
    %13 = vector.shape_cast %12 : vector<8xf32> to vector<8x1xf32>
    %cst_8 = arith.constant 3.200000e+01 : f32
    %14 = vector.broadcast %cst_8 : f32 to vector<8x1xf32>
    %15 = arith.divf %13, %14 : vector<8x1xf32>
    %16 = vector.broadcast %15 : vector<8x1xf32> to vector<8x32xf32>
    %17 = arith.subf %11, %16 : vector<8x32xf32>
    %18 = arith.mulf %17, %17 : vector<8x32xf32>
    %cst_9 = arith.constant dense<0.000000e+00> : vector<8xf32>
    %19 = vector.multi_reduction <add>, %18, %cst_9 [1] : vector<8x32xf32> to vector<8xf32>
    %20 = vector.shape_cast %19 : vector<8xf32> to vector<8x1xf32>
    %cst_10 = arith.constant 3.200000e+01 : f32
    %21 = vector.broadcast %cst_10 : f32 to vector<8x1xf32>
    %22 = arith.divf %20, %21 : vector<8x1xf32>
    %23 = vector.broadcast %15 : vector<8x1xf32> to vector<8x32xf32>
    %24 = arith.subf %11, %23 : vector<8x32xf32>
    %cst_11 = arith.constant 9.99999974E-6 : f32
    %25 = vector.broadcast %cst_11 : f32 to vector<8x1xf32>
    %26 = arith.addf %22, %25 : vector<8x1xf32>
    %27 = math.rsqrt %26 : vector<8x1xf32>
    %28 = vector.broadcast %27 : vector<8x1xf32> to vector<8x32xf32>
    %29 = arith.mulf %24, %28 : vector<8x32xf32>
    %30 = vector.broadcast %1 : vector<1x32xf32> to vector<8x32xf32>
    %31 = arith.mulf %29, %30 : vector<8x32xf32>
    %32 = vector.broadcast %3 : vector<1x32xf32> to vector<8x32xf32>
    %33 = arith.addf %31, %32 : vector<8x32xf32>
    %34 = arith.truncf %33 : vector<8x32xf32> to vector<8x32xbf16>
    %c0_12 = arith.constant 0 : index
    %c0_13 = arith.constant 0 : index
    %35 = vector.load %arg6[%c0_12, %c0_13] : memref<32x32xbf16, #tpu.memory_space<vmem>>, vector<32x32xbf16>
    %cst_14 = arith.constant dense<0.000000e+00> : vector<8x32xf32>
    %36 = tpu.matmul %34, %35, %cst_14 {dimension_numbers = #tpu.dot_dimension_numbers<[1], [0], [0], [1], [0, 0, 1, 1], [], []>} : vector<8x32xbf16>, vector<32x32xbf16>, vector<8x32xf32> -> vector<8x32xf32>
    %c0_15 = arith.constant 0 : index
    %c0_16 = arith.constant 0 : index
    %37 = vector.load %arg7[%c0_15, %c0_16] : memref<1x32xf32, #tpu.memory_space<vmem>>, vector<1x32xf32>
    %38 = vector.shape_cast %37 : vector<1x32xf32> to vector<32xf32>
    %39 = vector.shape_cast %38 : vector<32xf32> to vector<1x32xf32>
    %40 = vector.broadcast %39 : vector<1x32xf32> to vector<8x32xf32>
    %41 = arith.addf %36, %40 : vector<8x32xf32>
    %cst_17 = arith.constant 0.353553385 : f32
    %42 = vector.broadcast %cst_17 : f32 to vector<8x32xf32>
    %43 = arith.mulf %41, %42 : vector<8x32xf32>
    %44 = arith.truncf %43 : vector<8x32xf32> to vector<8x32xbf16>
    %c0_18 = arith.constant 0 : index
    %c0_19 = arith.constant 0 : index
    %45 = vector.load %arg13[%c0_18, %c0_19] : memref<8x64xbf16, #tpu.memory_space<vmem>>, vector<8x64xbf16>
    %c0_20 = arith.constant 0 : index
    %c0_21 = arith.constant 0 : index
    %c0_22 = arith.constant 0 : index
    %46 = vector.load %arg3[%c0_20, %c0_21, %c0_22] : memref<1x1x8xf32, #tpu.memory_space<vmem>>, vector<1x1x8xf32>
    %47 = vector.shape_cast %46 : vector<1x1x8xf32> to vector<1x8xf32>
    %48 = vector.shape_cast %47 : vector<1x8xf32> to vector<1x8xf32>
    %49 = vector.broadcast %48 : vector<1x8xf32> to vector<8x8xf32>
    %50 = vector.extract_strided_slice %44 {offsets = [0, 0], sizes = [8, 8], strides = [1, 1]} : vector<8x32xbf16> to vector<8x8xbf16>
    %51 = vector.extract_strided_slice %45 {offsets = [0, 0], sizes = [8, 8], strides = [1, 1]} : vector<8x64xbf16> to vector<8x8xbf16>
    %cst_23 = arith.constant dense<0.000000e+00> : vector<8x8xf32>
    %52 = tpu.matmul %50, %51, %cst_23 {dimension_numbers = #tpu.dot_dimension_numbers<[1], [1], [0], [0], [0, 0, 1, 0], [], []>} : vector<8x8xbf16>, vector<8x8xbf16>, vector<8x8xf32> -> vector<8x8xf32>
    %53 = arith.addf %52, %49 : vector<8x8xf32>
    %cst_24 = arith.constant dense<0xFF800000> : vector<8xf32>
    %54 = vector.multi_reduction <maximumf>, %53, %cst_24 [1] : vector<8x8xf32> to vector<8xf32>
    %55 = vector.shape_cast %54 : vector<8xf32> to vector<8x1xf32>
    %56 = vector.broadcast %55 : vector<8x1xf32> to vector<8x8xf32>
    %57 = arith.subf %53, %56 : vector<8x8xf32>
    %58 = math.exp %57 : vector<8x8xf32>
    %cst_25 = arith.constant dense<0.000000e+00> : vector<8xf32>
    %59 = vector.multi_reduction <add>, %58, %cst_25 [1] : vector<8x8xf32> to vector<8xf32>
    %60 = vector.shape_cast %59 : vector<8xf32> to vector<8x1xf32>
    %61 = arith.truncf %58 : vector<8x8xf32> to vector<8x8xbf16>
    %62 = vector.extract_strided_slice %45 {offsets = [0, 32], sizes = [8, 8], strides = [1, 1]} : vector<8x64xbf16> to vector<8x8xbf16>
    %cst_26 = arith.constant dense<0.000000e+00> : vector<8x8xf32>
    %63 = tpu.matmul %61, %62, %cst_26 {dimension_numbers = #tpu.dot_dimension_numbers<[1], [0], [0], [1], [0, 0, 1, 1], [], []>} : vector<8x8xbf16>, vector<8x8xbf16>, vector<8x8xf32> -> vector<8x8xf32>
    %64 = tpu.reciprocal %60 {approx = true} : vector<8x1xf32> -> vector<8x1xf32>
    %65 = vector.broadcast %64 : vector<8x1xf32> to vector<8x8xf32>
    %66 = arith.mulf %63, %65 : vector<8x8xf32>
    %67 = arith.truncf %66 : vector<8x8xf32> to vector<8x8xbf16>
    %68 = vector.extract_strided_slice %44 {offsets = [0, 8], sizes = [8, 8], strides = [1, 1]} : vector<8x32xbf16> to vector<8x8xbf16>
    %69 = vector.extract_strided_slice %45 {offsets = [0, 8], sizes = [8, 8], strides = [1, 1]} : vector<8x64xbf16> to vector<8x8xbf16>
    %cst_27 = arith.constant dense<0.000000e+00> : vector<8x8xf32>
    %70 = tpu.matmul %68, %69, %cst_27 {dimension_numbers = #tpu.dot_dimension_numbers<[1], [1], [0], [0], [0, 0, 1, 0], [], []>} : vector<8x8xbf16>, vector<8x8xbf16>, vector<8x8xf32> -> vector<8x8xf32>
    %71 = arith.addf %70, %49 : vector<8x8xf32>
    %cst_28 = arith.constant dense<0xFF800000> : vector<8xf32>
    %72 = vector.multi_reduction <maximumf>, %71, %cst_28 [1] : vector<8x8xf32> to vector<8xf32>
    %73 = vector.shape_cast %72 : vector<8xf32> to vector<8x1xf32>
    %74 = vector.broadcast %73 : vector<8x1xf32> to vector<8x8xf32>
    %75 = arith.subf %71, %74 : vector<8x8xf32>
    %76 = math.exp %75 : vector<8x8xf32>
    %cst_29 = arith.constant dense<0.000000e+00> : vector<8xf32>
    %77 = vector.multi_reduction <add>, %76, %cst_29 [1] : vector<8x8xf32> to vector<8xf32>
    %78 = vector.shape_cast %77 : vector<8xf32> to vector<8x1xf32>
    %79 = arith.truncf %76 : vector<8x8xf32> to vector<8x8xbf16>
    %80 = vector.extract_strided_slice %45 {offsets = [0, 40], sizes = [8, 8], strides = [1, 1]} : vector<8x64xbf16> to vector<8x8xbf16>
    %cst_30 = arith.constant dense<0.000000e+00> : vector<8x8xf32>
    %81 = tpu.matmul %79, %80, %cst_30 {dimension_numbers = #tpu.dot_dimension_numbers<[1], [0], [0], [1], [0, 0, 1, 1], [], []>} : vector<8x8xbf16>, vector<8x8xbf16>, vector<8x8xf32> -> vector<8x8xf32>
    %82 = tpu.reciprocal %78 {approx = true} : vector<8x1xf32> -> vector<8x1xf32>
    %83 = vector.broadcast %82 : vector<8x1xf32> to vector<8x8xf32>
    %84 = arith.mulf %81, %83 : vector<8x8xf32>
    %85 = arith.truncf %84 : vector<8x8xf32> to vector<8x8xbf16>
    %86 = vector.extract_strided_slice %44 {offsets = [0, 16], sizes = [8, 8], strides = [1, 1]} : vector<8x32xbf16> to vector<8x8xbf16>
    %87 = vector.extract_strided_slice %45 {offsets = [0, 16], sizes = [8, 8], strides = [1, 1]} : vector<8x64xbf16> to vector<8x8xbf16>
    %cst_31 = arith.constant dense<0.000000e+00> : vector<8x8xf32>
    %88 = tpu.matmul %86, %87, %cst_31 {dimension_numbers = #tpu.dot_dimension_numbers<[1], [1], [0], [0], [0, 0, 1, 0], [], []>} : vector<8x8xbf16>, vector<8x8xbf16>, vector<8x8xf32> -> vector<8x8xf32>
    %89 = arith.addf %88, %49 : vector<8x8xf32>
    %cst_32 = arith.constant dense<0xFF800000> : vector<8xf32>
    %90 = vector.multi_reduction <maximumf>, %89, %cst_32 [1] : vector<8x8xf32> to vector<8xf32>
    %91 = vector.shape_cast %90 : vector<8xf32> to vector<8x1xf32>
    %92 = vector.broadcast %91 : vector<8x1xf32> to vector<8x8xf32>
    %93 = arith.subf %89, %92 : vector<8x8xf32>
    %94 = math.exp %93 : vector<8x8xf32>
    %cst_33 = arith.constant dense<0.000000e+00> : vector<8xf32>
    %95 = vector.multi_reduction <add>, %94, %cst_33 [1] : vector<8x8xf32> to vector<8xf32>
    %96 = vector.shape_cast %95 : vector<8xf32> to vector<8x1xf32>
    %97 = arith.truncf %94 : vector<8x8xf32> to vector<8x8xbf16>
    %98 = vector.extract_strided_slice %45 {offsets = [0, 48], sizes = [8, 8], strides = [1, 1]} : vector<8x64xbf16> to vector<8x8xbf16>
    %cst_34 = arith.constant dense<0.000000e+00> : vector<8x8xf32>
    %99 = tpu.matmul %97, %98, %cst_34 {dimension_numbers = #tpu.dot_dimension_numbers<[1], [0], [0], [1], [0, 0, 1, 1], [], []>} : vector<8x8xbf16>, vector<8x8xbf16>, vector<8x8xf32> -> vector<8x8xf32>
    %100 = tpu.reciprocal %96 {approx = true} : vector<8x1xf32> -> vector<8x1xf32>
    %101 = vector.broadcast %100 : vector<8x1xf32> to vector<8x8xf32>
    %102 = arith.mulf %99, %101 : vector<8x8xf32>
    %103 = arith.truncf %102 : vector<8x8xf32> to vector<8x8xbf16>
    %104 = vector.extract_strided_slice %44 {offsets = [0, 24], sizes = [8, 8], strides = [1, 1]} : vector<8x32xbf16> to vector<8x8xbf16>
    %105 = vector.extract_strided_slice %45 {offsets = [0, 24], sizes = [8, 8], strides = [1, 1]} : vector<8x64xbf16> to vector<8x8xbf16>
    %cst_35 = arith.constant dense<0.000000e+00> : vector<8x8xf32>
    %106 = tpu.matmul %104, %105, %cst_35 {dimension_numbers = #tpu.dot_dimension_numbers<[1], [1], [0], [0], [0, 0, 1, 0], [], []>} : vector<8x8xbf16>, vector<8x8xbf16>, vector<8x8xf32> -> vector<8x8xf32>
    %107 = arith.addf %106, %49 : vector<8x8xf32>
    %cst_36 = arith.constant dense<0xFF800000> : vector<8xf32>
    %108 = vector.multi_reduction <maximumf>, %107, %cst_36 [1] : vector<8x8xf32> to vector<8xf32>
    %109 = vector.shape_cast %108 : vector<8xf32> to vector<8x1xf32>
    %110 = vector.broadcast %109 : vector<8x1xf32> to vector<8x8xf32>
    %111 = arith.subf %107, %110 : vector<8x8xf32>
    %112 = math.exp %111 : vector<8x8xf32>
    %cst_37 = arith.constant dense<0.000000e+00> : vector<8xf32>
    %113 = vector.multi_reduction <add>, %112, %cst_37 [1] : vector<8x8xf32> to vector<8xf32>
    %114 = vector.shape_cast %113 : vector<8xf32> to vector<8x1xf32>
    %115 = arith.truncf %112 : vector<8x8xf32> to vector<8x8xbf16>
    %116 = vector.extract_strided_slice %45 {offsets = [0, 56], sizes = [8, 8], strides = [1, 1]} : vector<8x64xbf16> to vector<8x8xbf16>
    %cst_38 = arith.constant dense<0.000000e+00> : vector<8x8xf32>
    %117 = tpu.matmul %115, %116, %cst_38 {dimension_numbers = #tpu.dot_dimension_numbers<[1], [0], [0], [1], [0, 0, 1, 1], [], []>} : vector<8x8xbf16>, vector<8x8xbf16>, vector<8x8xf32> -> vector<8x8xf32>
    %118 = tpu.reciprocal %114 {approx = true} : vector<8x1xf32> -> vector<8x1xf32>
    %119 = vector.broadcast %118 : vector<8x1xf32> to vector<8x8xf32>
    %120 = arith.mulf %117, %119 : vector<8x8xf32>
    %121 = arith.truncf %120 : vector<8x8xf32> to vector<8x8xbf16>
    %122 = tpu.concatenate %67, %85, %103, %121 in 1 : vector<8x8xbf16>, vector<8x8xbf16>, vector<8x8xbf16>, vector<8x8xbf16> -> vector<8x32xbf16>
    %c0_39 = arith.constant 0 : index
    %c0_40 = arith.constant 0 : index
    %123 = vector.load %arg10[%c0_39, %c0_40] : memref<32x32xbf16, #tpu.memory_space<vmem>>, vector<32x32xbf16>
    %cst_41 = arith.constant dense<0.000000e+00> : vector<8x32xf32>
    %124 = tpu.matmul %122, %123, %cst_41 {dimension_numbers = #tpu.dot_dimension_numbers<[1], [0], [0], [1], [0, 0, 1, 1], [], []>} : vector<8x32xbf16>, vector<32x32xbf16>, vector<8x32xf32> -> vector<8x32xf32>
    %c0_42 = arith.constant 0 : index
    %c0_43 = arith.constant 0 : index
    %125 = vector.load %arg11[%c0_42, %c0_43] : memref<1x32xf32, #tpu.memory_space<vmem>>, vector<1x32xf32>
    %126 = vector.shape_cast %125 : vector<1x32xf32> to vector<32xf32>
    %127 = vector.shape_cast %126 : vector<32xf32> to vector<1x32xf32>
    %128 = vector.broadcast %127 : vector<1x32xf32> to vector<8x32xf32>
    %129 = arith.addf %124, %128 : vector<8x32xf32>
    %130 = arith.addf %129, %11 : vector<8x32xf32>
    %c0_44 = arith.constant 0 : index
    %c0_45 = arith.constant 0 : index
    %c0_46 = arith.constant 0 : index
    %131 = vector.load %arg12[%c0_44, %c0_45, %c0_46] : memref<1x8x32xf32, #tpu.memory_space<vmem>>, vector<1x8x32xf32>
    %132 = vector.shape_cast %131 : vector<1x8x32xf32> to vector<8x32xf32>
    %133 = vector.shape_cast %130 : vector<8x32xf32> to vector<1x8x32xf32>
    tpu.vector_store %arg12[%c0_44, %c0_45, %c0_46], %133 {strides = array<i32>} : memref<1x8x32xf32, #tpu.memory_space<vmem>>, vector<1x8x32xf32>,
    return
  }
  func.func @transform_0(%arg0: i32, %arg1: i32) -> (i32, i32, i32) {
    %c0_i32 = arith.constant 0 : i32
    %c0_i32_0 = arith.constant 0 : i32
    %c0_i32_1 = arith.constant 0 : i32
    return %arg0, %c0_i32, %c0_i32_0 : i32, i32, i32
  }
  func.func @transform_1(%arg0: i32, %arg1: i32) -> (i32, i32, i32) {
    %c0_i32 = arith.constant 0 : i32
    %c0_i32_0 = arith.constant 0 : i32
    %c0_i32_1 = arith.constant 0 : i32
    return %arg0, %c0_i32, %c0_i32_0 : i32, i32, i32
  }
  func.func @transform_2(%arg0: i32, %arg1: i32) -> (i32, i32, i32) {
    %c0_i32 = arith.constant 0 : i32
    %c0_i32_0 = arith.constant 0 : i32
    %c0_i32_1 = arith.constant 0 : i32
    return %arg0, %c0_i32, %c0_i32_0 : i32, i32, i32
  }
  func.func @transform_3(%arg0: i32, %arg1: i32) -> (i32, i32, i32) {
    %c0_i32 = arith.constant 0 : i32
    %c0_i32_0 = arith.constant 0 : i32
    %c0_i32_1 = arith.constant 0 : i32
    return %arg0, %c0_i32, %c0_i32_0 : i32, i32, i32
  }
  func.func @transform_4(%arg0: i32, %arg1: i32) -> (i32, i32) {
    %c0_i32 = arith.constant 0 : i32
    %c0_i32_0 = arith.constant 0 : i32
    %c0_i32_1 = arith.constant 0 : i32
    return %c0_i32, %c0_i32_0 : i32, i32
  }
  func.func @transform_5(%arg0: i32, %arg1: i32) -> (i32, i32) {
    %c0_i32 = arith.constant 0 : i32
    %c0_i32_0 = arith.constant 0 : i32
    %c0_i32_1 = arith.constant 0 : i32
    return %c0_i32, %c0_i32_0 : i32, i32
  }
  func.func @transform_6(%arg0: i32, %arg1: i32) -> (i32, i32) {
    %c0_i32 = arith.constant 0 : i32
    %c0_i32_0 = arith.constant 0 : i32
    %c0_i32_1 = arith.constant 0 : i32
    return %c0_i32, %c0_i32_0 : i32, i32
  }
  func.func @transform_7(%arg0: i32, %arg1: i32) -> (i32, i32) {
    %c0_i32 = arith.constant 0 : i32
    %c0_i32_0 = arith.constant 0 : i32
    %c0_i32_1 = arith.constant 0 : i32
    return %c0_i32, %c0_i32_0 : i32, i32
  }
  func.func @transform_8(%arg0: i32, %arg1: i32) -> (i32, i32) {
    %c0_i32 = arith.constant 0 : i32
    %c0_i32_0 = arith.constant 0 : i32
    %c0_i32_1 = arith.constant 0 : i32
    return %c0_i32, %c0_i32_0 : i32, i32
  }
  func.func @transform_9(%arg0: i32, %arg1: i32) -> (i32, i32) {
    %c0_i32 = arith.constant 0 : i32
    %c0_i32_0 = arith.constant 0 : i32
    %c0_i32_1 = arith.constant 0 : i32
    return %c0_i32, %c0_i32_0 : i32, i32
  }
  func.func @transform_10(%arg0: i32, %arg1: i32) -> (i32, i32, i32) {
    %c0_i32 = arith.constant 0 : i32
    %c0_i32_0 = arith.constant 0 : i32
    return %arg0, %arg1, %c0_i32 : i32, i32, i32
  }
}

</mosaic_0001>

<bundles_post_ra>
// kernel: tpu_custom_call.1
= control target key start
LH: loop header
LB: loop body
LE: loop exit
PB: predicated region body
PF: predicated region fallthrough
CT: control target
= control target key end

     0   :  { %s2871_s0 = inlined_call_operand.hbm [shape: f32[2,8,32], index: 0, kind: input, shape index: {}]   ;;  %s2872_s1 = inlined_call_operand.hbm [shape: f32[2,1,8], index: 1, kind: input, shape index: {}]   ;;  %s2873_s2 = inlined_call_operand.hbm [shape: f32[2,1,32], index: 2, kind: input, shape index: {}]   ;;  %s2874_s3 = inlined_call_operand.hbm [shape: f32[2,1,32], index: 3, kind: input, shape index: {}]   ;;  %s2875_s4 = inlined_call_operand.hbm [shape: bf16[32,32], index: 4, kind: input, shape index: {}]   ;;  %s2876_s5 = inlined_call_operand.hbm [shape: f32[1,32], index: 5, kind: input, shape index: {}]   ;;  %s2877_s6 = inlined_call_operand.hbm [shape: bf16[32,64], index: 6, kind: input, shape index: {}]   ;;  %s2878_s7 = inlined_call_operand.hbm [shape: f32[1,64], index: 7, kind: input, shape index: {}]   ;;  %s2879_s8 = inlined_call_operand.hbm [shape: bf16[32,32], index: 8, kind: input, shape index: {}]   ;;  %s2880_s9 = inlined_call_operand.hbm [shape: f32[1,32], index: 9, kind: input, shape index: {}]   ;;  %s2881_s10 = inlined_call_operand.hbm [shape: f32[2,8,32], index: 10, kind: output, shape index: {}]  }
   0x1   :  { %2906 = sst [smem:[#allocation36_spill]] %s2872_s1 }
   0x2   :  { %2907 = sst [smem:[#allocation37_spill]] %s2874_s3 }
   0x3   :  { %2908 = sst [smem:[#allocation38_spill]] %s2875_s4 }
   0x4   :  { %2909 = sst [smem:[#allocation39_spill]] %s2876_s5 }
   0x5   :  { %2910 = sst [smem:[#allocation40_spill]] %s2877_s6 }
   0x6   :  { %2911 = sst [smem:[#allocation41_spill]] %s2878_s7 }
   0x7   :  { %2912 = sst [smem:[#allocation42_spill]] %s2881_s10 }
   0x8   :  { %15 = vsyncpa [#allocation4], 0 }
   0x9   :  { %17 = vsyncpa [#allocation4 + $0x1], 0 }
   0xa   :  { %18 = vsyncpa [#allocation7], 0 }
   0xb   :  { %20 = vsyncpa [#allocation7 + $0x1], 0 }
   0xc   :  { %21 = vsyncpa [#allocation10], 0 }
   0xd   :  { %23 = vsyncpa [#allocation10 + $0x1], 0 }
   0xe   :  { %24 = vsyncpa [#allocation13], 0 }
   0xf   :  { %25 = vsyncpa [#allocation16], 0 }
  0x10   :  { %26 = vsyncpa [#allocation19], 0 }
  0x11   :  { %27 = vsyncpa [#allocation5], 0 }
  0x12   :  { %29 = vsyncpa [#allocation5 + $0x1], 0  ;;  %s2330_s13 = smov 0   ;;  %s2332_s14 = smov 0  }
  0x13   :  { %s2334_s15 = smov 0   ;;  %s2336_s16 = smov 0  }
  0x14   :  { %s2338_s17 = smov 0   ;;  %s2340_s18 = smov 0  }
  0x15 LB: > { %2913 = sst [smem:[#allocation29_spill]] %s2228_s13  ;;  %s2361_s19 = sadd.s32 4294967295, %s2248_s18   ;;  %s2248_s18 = sphi %s2340_s18, %s35_s18   ;;  %s2244_s17 = sphi %s2338_s17, %s2969_s17   ;;  %s2240_s16 = sphi %s2336_s16, %s2968_s16   ;;  %s2236_s15 = sphi %s2334_s15, %s2964_s15   ;;  %s2232_s14 = sphi %s2332_s14, %s2967_s14   ;;  %s2228_s13 = sphi %s2330_s13, %s2966_s13  }
  0x16   : > { %2914 = sst [smem:[#allocation30_spill]] %s2236_s15  ;;  %p1528_p0 = scmp.ge.s32.totalorder %s2248_s18, 1 }
  0x17   : > { %2915 = sst [smem:[#allocation31_spill]] %s2240_s16  ;;  %p2885_p1 = scmp.eq.s32.totalorder %s2361_s19, 0 }
  0x18   : > { %p310_p2 = scmp.lt.s32.totalorder %s2248_s18, 3  ;;  %s2250_s21 = smov [#allocation11]  }
  0x19   : > { %s322_s22 = sshll.u32 %s2250_s21, 4  ;;  %s2251_s24 = smov [#allocation12]   ;;  %s2370_s22 = int_to_ptr.vmem [resolvable:$true] %s322_s22 }
  0x1a   : > { %p2366_p3 = pnand %p1528_p0, %p310_p2  ;;  %s336_s25 = sshll.u32 %s2251_s24, 4  ;;  %s2381_s25 = int_to_ptr.vmem [resolvable:$true] %s336_s25 }
  0x1b   : > { %s2252_s26 = smov [#allocation15]   ;;  %s2919_s4 = sld [smem:[#allocation38_spill]] }
  0x1c   : > { %s2916_s20 = scalar_select %p2366_p3, 1, 0 }
  0x1d   : > { %p1709_p4 = pneg %p2366_p3  ;;  %s2383_s27 = sshll.u32 %s2252_s26, 4  ;;  %s361_s27 = int_to_ptr.vmem [resolvable:$true] %s2383_s27 }
  0x1e   : > { %2917 = sst [smem:[#allocation32_spill]] %s2916_s20 }
  0x1f   : > { %p2377_p6 = pnand %p1709_p4, %p2885_p1 }
  0x21   : > { %s2918_s23 = scalar_select %p2377_p6, 1, 0 }
  0x22   : > { %s1854_s30 = scalar_lea.hbm %s2919_s4, 256  ;;  %p2393_p8 = pneg %p2377_p6 }
  0x23   : > { %p1855_p7 = scmp.ne.s32.totalorder %s2919_s4, %s1854_s30  ;;  %p1861_p11 = scmp.lt.u32.totalorder %s1854_s30, %s2919_s4 }
  0x24   : > { %s2920_s21 = scalar_select %p2393_p8, 1, 0 }
  0x25   : > { %p1857_p9 = pnand %p2393_p8, %p1855_p7 }
  0x27   : > { %p1858_p10 = pneg %p1857_p9 }
  0x29   : > { %p1863_p12 = pnand %p1861_p11, %p1858_p10 }
  0x2b   : > { %1866 = shalt.err (!%p1863_p12)
}
  0x2c   : > { %s1867_s28 = scalar_lea.vmem %s2370_s22, 256  ;;  %p1875_p4 = scmp.lt.s32.totalorder %s2370_s22, %s2370_s22 }
  0x2d   : > { %p1868_p13 = scmp.ne.s32.totalorder %s2370_s22, %s1867_s28  ;;  %p1876_p5 = scmp.lt.s32.totalorder %s1867_s28, %s1867_s28 }
  0x2f   : > { %p1870_p0 = pnand %p1868_p13, %p2393_p8  ;;  %p1877_p7 = por %p1876_p5, %p1875_p4 }
  0x31   : > { %p1871_p2 = pneg %p1870_p0 }
  0x33   : > { %p1878_p9 = pnand %p1877_p7, %p1871_p2 }
  0x35   : > { %1881 = shalt.err (!%p1878_p9)
}
  0x36   : > { %s2887_s29 = smov 64   ;;  %s2889_s30 = smov 4  }
  0x37   : > { %1712 = dma.hbm_to_vmem [thread:$0]  (!%p2377_p6), %s2919_s4, 256, %s2370_s22, [#allocation10], %s2887_s29, %s2887_s29, %s2889_s30  }
  0x38   : > { %s2921_s5 = sld [smem:[#allocation39_spill]] }
  0x3e   : > { %s1882_s28 = scalar_lea.hbm %s2921_s5, 16 }
  0x3f   : > { %p1883_p5 = scmp.ne.s32.totalorder %s2921_s5, %s1882_s28  ;;  %p1889_p12 = scmp.lt.u32.totalorder %s1882_s28, %s2921_s5 }
  0x41   : > { %p1885_p10 = pnand %p1883_p5, %p2393_p8 }
  0x43   : > { %p1886_p11 = pneg %p1885_p10 }
  0x45   : > { %p1891_p13 = pnand %p1889_p12, %p1886_p11 }
  0x47   : > { %1894 = shalt.err (!%p1891_p13)
}
  0x48   : > { %s1895_s22 = scalar_lea.vmem %s2381_s25, 16  ;;  %s1902_s10 = scalar_lea.vmem %s2381_s25, 32 }
  0x49   : > { %p1896_p0 = scmp.ne.s32.totalorder %s2381_s25, %s1895_s22  ;;  %p1903_p7 = scmp.lt.s32.totalorder %s2381_s25, %s2381_s25 }
  0x4a   : > { %p1904_p9 = scmp.lt.s32.totalorder %s1902_s10, %s1895_s22 }
  0x4b   : > { %p1898_p2 = pnand %p1896_p0, %p2393_p8 }
  0x4c   : > { %p1905_p5 = por %p1904_p9, %p1903_p7 }
  0x4d   : > { %p1899_p4 = pneg %p1898_p2 }
  0x4f   : > { %p1906_p10 = pnand %p1905_p5, %p1899_p4 }
  0x51   : > { %1909 = shalt.err (!%p1906_p10)
}
  0x52   : > { %1715 = dma.hbm_to_vmem [thread:$0]  (!%p2377_p6), %s2921_s5, 16, %s2381_s25, [#allocation13]  }
  0x53   : > { %s2922_s7 = sld [smem:[#allocation41_spill]] }
  0x59   : > { %s1910_s12 = scalar_lea.hbm %s2922_s7, 16 }
  0x5a   : > { %p1911_p11 = scmp.ne.s32.totalorder %s2922_s7, %s1910_s12  ;;  %p1917_p0 = scmp.lt.u32.totalorder %s1910_s12, %s2922_s7 }
  0x5c   : > { %p1913_p12 = pnand %p1911_p11, %p2393_p8 }
  0x5e   : > { %p1914_p13 = pneg %p1913_p12 }
  0x60   : > { %p1919_p2 = pnand %p1917_p0, %p1914_p13 }
  0x62   : > { %1922 = shalt.err (!%p1919_p2)
}
  0x63   : > { %s1923_s10 = scalar_lea.vmem %s361_s27, 16  ;;  %s1930_s25 = scalar_lea.vmem %s361_s27, 32 }
  0x64   : > { %p1924_p4 = scmp.ne.s32.totalorder %s361_s27, %s1923_s10  ;;  %p1931_p5 = scmp.lt.s32.totalorder %s361_s27, %s361_s27 }
  0x65   : > { %p1932_p10 = scmp.lt.s32.totalorder %s1930_s25, %s1923_s10 }
  0x66   : > { %p1926_p7 = pnand %p1924_p4, %p2393_p8 }
  0x67   : > { %p1933_p1 = por %p1932_p10, %p1931_p5 }
  0x68   : > { %p1927_p9 = pneg %p1926_p7 }
  0x6a   : > { %p1934_p3 = pnand %p1933_p1, %p1927_p9 }
  0x6c   : > { %1937 = shalt.err (!%p1934_p3)
}
  0x6d   : > { %1721 = dma.hbm_to_vmem [thread:$0]  (!%p2377_p6), %s2922_s7, 16, %s361_s27, [#allocation16]  }
  0x6e   : > { %s1527_s20 = sadd.s32 4294967294, %s2248_s18   ;;  %s47_s11 = sadd.s32 1, %s2244_s17 }
  0x6f   : > { %s54_s12 = sadd.s32 1, %s2236_s15  ;;  %p49_p1 = scmp.ge.s32.totalorder %s47_s11, 2 }
  0x70   : > { %p61_p3 = scmp.ne.s32.totalorder %s2236_s15, %s2232_s14  ;;  %p62_p11 = scmp.eq.s32.totalorder %s2248_s18, 0 }
  0x71   : > { %p67_p12 = scmp.ne.s32.totalorder %s2232_s14, %s2228_s13  ;;  %s2971_s11 = smov (%p49_p1, %s47_s11), 0 }
  0x72   : > { %2923 = sst [smem:[#allocation33_spill]] %s2971_s11  ;;  %p63_p13 = por %p62_p11, %p61_p3 }
  0x73   : > { %p2924_p0 = scmp.eq.s32.totalorder %s2361_s19, 0  ;;  %s51_s27 = ssub.s32 %s2244_s17, %s2971_s11 }
  0x74   : > { %p297_p4 = scmp.eq.s32.totalorder %s2361_s19, 1  ;;  %p52_p7 = scmp.eq.s32.totalorder %s51_s27, 0 }
  0x75   : > { %p2472_p2 = por %p2924_p0, %p67_p12  ;;  %p303_p9 = scmp.eq.s32.totalorder %s1527_s20, 1 }
  0x76   : > { %p2479_p5 = por %p297_p4, %p61_p3  ;;  %p1751_p10 = scmp.lt.s32.totalorder %s2248_s18, 2 }
  0x77   : > { %s2925_s24 = scalar_select %p2472_p2, 1, 0 }
  0x78   : > { %s2926_s26 = scalar_select %p2479_p5, 1, 0 }
  0x79   : > { %s2485_s28 = scalar_select %p52_p7, %s2236_s15, %s54_s12  }
  0x7a   : > { %p2487_p1 = por %p303_p9, %p67_p12  ;;  %s2492_s10 = sand.u32 1, %s2236_s15  }
  0x7b   : > { %2927 = sst [smem:[#allocation34_spill]] %s2485_s28  ;;  %p2494_p11 = pnand %p1751_p10, %p63_p13 }
  0x7c   : > { %s2928_s22 = scalar_select %p2487_p1, 1, 0 }
  0x7d   : > { %s2930_s25 = scalar_select %p2494_p11, 1, 0 }
  0x7e   : > { %2929 = sst [smem:[#allocation35_spill]] %s2928_s22  ;;  %s2893_s3 = sand.u32 1, %s2248_s18  }
  0x7f   : > { %s2500_s16 = sshll.u32 %s2244_s17, 4  ;;  %s2931_s1 = sld [smem:[#allocation36_spill]] }
  0x80   : > { %s416_s29 = scalar_lea.vmem [#allocation6], %s2492_s10  ;;  %s2513_s4 = scalar_lea.sflag [#allocation7], %s2893_s3 }
  0x81   : > { %s423_s30 = sshll.u32 %s416_s29, 4  ;;  %p2519_p12 = pneg %p2494_p11  ;;  %s2509_s30 = int_to_ptr.vmem [resolvable:$true] %s423_s30 }
  0x83   : > { %s2932_s7 = scalar_select %p2519_p12, 1, 0 }
  0x85   : > { %s2506_s12 = scalar_lea.hbm %s2931_s1, %s2500_s16  ;;  %s1943_s29 = scalar_lea.hbm %s2931_s1, 32 }
  0x86   : > { %s1938_s5 = scalar_lea.hbm %s2506_s12, 16  ;;  %p1944_p4 = scmp.lt.u32.totalorder %s2506_s12, %s2931_s1 }
  0x87   : > { %p1939_p3 = scmp.ne.s32.totalorder %s2506_s12, %s1938_s5  ;;  %p1945_p7 = scmp.lt.u32.totalorder %s1943_s29, %s1938_s5 }
  0x88   : > { %p1947_p10 = scmp.lt.u32.totalorder %s1938_s5, %s2506_s12 }
  0x89   : > { %p1941_p13 = pnand %p2519_p12, %p1939_p3  ;;  %p1946_p9 = por %p1945_p7, %p1944_p4 }
  0x8b   : > { %p1942_p0 = pneg %p1941_p13  ;;  %p1948_p1 = por %p1947_p10, %p1946_p9 }
  0x8d   : > { %p1949_p5 = pnand %p1948_p1, %p1942_p0 }
  0x8f   : > { %1952 = shalt.err (!%p1949_p5)
}
  0x90   : > { %s1953_s3 = scalar_lea.vmem %s2509_s30, 16  ;;  %s2255_s20 = smov [#allocation6]  }
  0x91   : > { %p1954_p3 = scmp.ne.s32.totalorder %s2509_s30, %s1953_s3  ;;  %s1958_s27 = sshll.u32 %s2255_s20, 4  ;;  %s1959_s27 = int_to_ptr.vmem [resolvable:$false] %s1958_s27 }
  0x92   : > { %s1960_s11 = scalar_lea.vmem %s1959_s27, 32  ;;  %p1961_p6 = scmp.lt.s32.totalorder %s2509_s30, %s1959_s27 }
  0x93   : > { %p1956_p13 = pnand %p1954_p3, %p2519_p12  ;;  %p1962_p8 = scmp.lt.s32.totalorder %s1960_s11, %s1953_s3 }
  0x95   : > { %p1957_p2 = pneg %p1956_p13  ;;  %p1963_p4 = por %p1962_p8, %p1961_p6 }
  0x97   : > { %p1964_p7 = pnand %p1963_p4, %p1957_p2 }
  0x99   : > { %1967 = shalt.err (!%p1964_p7)
}
  0x9a   : > { %1734 = dma.hbm_to_vmem [thread:$0]  (!%p2494_p11), %s2506_s12, 16, %s2509_s30, %s2513_s4  }
  0x9b   : > { %s2256_s5 = smov [#allocation14]   ;;  %s2257_s29 = smov [#allocation17]  }
  0x9c   : > { %s346_s28 = sshll.u32 %s2256_s5, 4  ;;  %s370_s1 = sshll.u32 %s2257_s29, 4  ;;  %s347_s28 = int_to_ptr.vmem [resolvable:$true] %s346_s28  ;;  %s2543_s1 = int_to_ptr.vmem [resolvable:$true] %s370_s1 }
  0x9d   : > { %s2933_s6 = sld [smem:[#allocation40_spill]]  ;;  %p2934_p8 = scmp.ne.s32.totalorder %s2920_s21, 0 }
  0xa3   : > { %s1968_s3 = scalar_lea.hbm %s2933_s6, 256 }
  0xa4   : > { %p1969_p6 = scmp.ne.s32.totalorder %s2933_s6, %s1968_s3  ;;  %p1975_p1 = scmp.lt.u32.totalorder %s1968_s3, %s2933_s6 }
  0xa6   : > { %p1971_p2 = pnand %p1969_p6, %p2934_p8 }
  0xa8   : > { %p1972_p5 = pneg %p1971_p2 }
  0xaa   : > { %p1977_p0 = pnand %p1975_p1, %p1972_p5 }
  0xac   : > { %1980 = shalt.err (!%p1977_p0)
}
  0xad   : > { %s1981_s12 = scalar_lea.vmem %s347_s28, 256  ;;  %p1989_p13 = scmp.lt.s32.totalorder %s347_s28, %s347_s28 }
  0xae   : > { %p1982_p9 = scmp.ne.s32.totalorder %s347_s28, %s1981_s12  ;;  %p1990_p4 = scmp.lt.s32.totalorder %s1981_s12, %s1981_s12 }
  0xb0   : > { %p1984_p10 = pnand %p1982_p9, %p2934_p8  ;;  %p1991_p7 = por %p1990_p4, %p1989_p13 }
  0xb2   : > { %p1985_p3 = pneg %p1984_p10 }
  0xb4   : > { %p1992_p11 = pnand %p1991_p7, %p1985_p3 }
  0xb6   : > { %1995 = shalt.err (!%p1992_p11)
}
  0xb7   : > { %p2935_p6 = scmp.ne.s32.totalorder %s2918_s23, 0  ;;  %s2936_s15 = smov 4  }
  0xb8   : > { %s2937_s5 = smov 64   ;;  %s1996_s3 = scalar_lea.hbm %s2879_s8, 256 }
  0xb9   : > { %1718 = dma.hbm_to_vmem [thread:$0]  (!%p2935_p6), %s2933_s6, 256, %s347_s28, [#allocation13], %s2937_s5, %s2937_s5, %s2936_s15  }
  0xba   : > { %p1997_p2 = scmp.ne.s32.totalorder %s2879_s8, %s1996_s3  ;;  %p2003_p1 = scmp.lt.u32.totalorder %s1996_s3, %s2879_s8 }
  0xbc   : > { %p1999_p11 = pnand %p1997_p2, %p2934_p8 }
  0xbe   : > { %p2000_p5 = pneg %p1999_p11 }
  0xc0   : > { %p2005_p0 = pnand %p2003_p1, %p2000_p5 }
  0xc2   : > { %2008 = shalt.err (!%p2005_p0)
}
  0xc3   : > { %s2009_s28 = scalar_lea.vmem %s2543_s1, 256  ;;  %p2017_p13 = scmp.lt.s32.totalorder %s2543_s1, %s2543_s1 }
  0xc4   : > { %p2010_p9 = scmp.ne.s32.totalorder %s2543_s1, %s2009_s28  ;;  %p2018_p4 = scmp.lt.s32.totalorder %s2009_s28, %s2009_s28 }
  0xc6   : > { %p2012_p10 = pnand %p2010_p9, %p2934_p8  ;;  %p2019_p7 = por %p2018_p4, %p2017_p13 }
  0xc8   : > { %p2013_p3 = pneg %p2012_p10 }
  0xca   : > { %p2020_p2 = pnand %p2019_p7, %p2013_p3 }
  0xcc   : > { %2023 = shalt.err (!%p2020_p2)
}
  0xcd   : > { %1724 = dma.hbm_to_vmem [thread:$0]  (!%p2935_p6), %s2879_s8, 256, %s2543_s1, [#allocation16], %s2937_s5, %s2937_s5, %s2936_s15  }
  0xce   : > { %s2258_s29 = smov [#allocation18]   ;;  %s1536_s27 = sshll.u32 %s2492_s10, 3 }
  0xcf   : > { %s384_s20 = sshll.u32 %s2258_s29, 4  ;;  %s2024_s30 = scalar_lea.hbm %s2880_s9, 16  ;;  %s385_s20 = int_to_ptr.vmem [resolvable:$true] %s384_s20 }
  0xd0   : > { %p2025_p11 = scmp.ne.s32.totalorder %s2880_s9, %s2024_s30  ;;  %p2031_p0 = scmp.lt.u32.totalorder %s2024_s30, %s2880_s9 }
  0xd2   : > { %p2027_p5 = pnand %p2025_p11, %p2934_p8 }
  0xd4   : > { %p2028_p1 = pneg %p2027_p5 }
  0xd6   : > { %p2033_p9 = pnand %p2031_p0, %p2028_p1 }
  0xd8   : > { %2036 = shalt.err (!%p2033_p9)
}
  0xd9   : > { %s2037_s1 = scalar_lea.vmem %s385_s20, 16  ;;  %s2044_s15 = scalar_lea.vmem %s385_s20, 32 }
  0xda   : > { %p2038_p10 = scmp.ne.s32.totalorder %s385_s20, %s2037_s1  ;;  %p2045_p4 = scmp.lt.s32.totalorder %s385_s20, %s385_s20 }
  0xdb   : > { %p2046_p7 = scmp.lt.s32.totalorder %s2044_s15, %s2037_s1 }
  0xdc   : > { %p2040_p3 = pnand %p2038_p10, %p2934_p8 }
  0xdd   : > { %p2047_p2 = por %p2046_p7, %p2045_p4 }
  0xde   : > { %p2041_p13 = pneg %p2040_p3 }
  0xe0   : > { %p2048_p12 = pnand %p2047_p2, %p2041_p13 }
  0xe2   : > { %2051 = shalt.err (!%p2048_p12)
}
  0xe3   : > { %1727 = dma.hbm_to_vmem [thread:$0]  (!%p2935_p6), %s2880_s9, 16, %s385_s20, [#allocation19]  }
  0xe4   : > { %s1537_s6 = sshll.u32 %s2244_s17, 7  ;;  %s399_s29 = scalar_lea.vmem [#allocation3], %s1536_s27 }
  0xe5   : > { %s406_s21 = sshll.u32 %s399_s29, 4  ;;  %s2615_s30 = scalar_lea.hbm %s2871_s0, %s1537_s6  ;;  %s407_s21 = int_to_ptr.vmem [resolvable:$true] %s406_s21 }
  0xe6   : > { %s396_s23 = scalar_lea.sflag [#allocation4], %s2492_s10  ;;  %s2052_s12 = scalar_lea.hbm %s2615_s30, 128 }
  0xe7   : > { %p2053_p12 = scmp.ne.s32.totalorder %s2615_s30, %s2052_s12  ;;  %p2938_p8 = scmp.ne.s32.totalorder %s2932_s7, 0 }
  0xe8   : > { %s2057_s27 = scalar_lea.hbm %s2871_s0, 256  ;;  %p2058_p6 = scmp.lt.u32.totalorder %s2615_s30, %s2871_s0 }
  0xe9   : > { %p2055_p11 = pnand %p2053_p12, %p2938_p8  ;;  %p2059_p1 = scmp.lt.u32.totalorder %s2057_s27, %s2052_s12 }
  0xea   : > { %p2061_p9 = scmp.lt.u32.totalorder %s2052_s12, %s2615_s30 }
  0xeb   : > { %p2056_p5 = pneg %p2055_p11  ;;  %p2060_p0 = por %p2059_p1, %p2058_p6 }
  0xed   : > { %p2062_p10 = por %p2061_p9, %p2060_p0 }
  0xef   : > { %p2063_p3 = pnand %p2062_p10, %p2056_p5 }
  0xf1   : > { %2066 = shalt.err (!%p2063_p3)
}
  0xf2   : > { %s2067_s15 = scalar_lea.vmem %s407_s21, 128  ;;  %s2259_s5 = smov [#allocation3]  }
  0xf3   : > { %p2068_p13 = scmp.ne.s32.totalorder %s407_s21, %s2067_s15  ;;  %s2072_s22 = sshll.u32 %s2259_s5, 4  ;;  %s2073_s22 = int_to_ptr.vmem [resolvable:$false] %s2072_s22 }
  0xf4   : > { %s2074_s6 = scalar_lea.vmem %s2073_s22, 256  ;;  %p2075_p2 = scmp.lt.s32.totalorder %s407_s21, %s2073_s22 }
  0xf5   : > { %p2070_p4 = pnand %p2068_p13, %p2938_p8  ;;  %p2076_p12 = scmp.lt.s32.totalorder %s2074_s6, %s2067_s15 }
  0xf7   : > { %p2071_p7 = pneg %p2070_p4  ;;  %p2077_p11 = por %p2076_p12, %p2075_p2 }
  0xf9   : > { %p2078_p1 = pnand %p2077_p11, %p2071_p7 }
  0xfb   : > { %2081 = shalt.err (!%p2078_p1)
}
  0xfc   : > { %p2939_p6 = scmp.ne.s32.totalorder %s2930_s25, 0  ;;  %s2639_s11 = scalar_lea.hbm %s2873_s2, %s2500_s16 }
  0xfd   : > { %s433_s12 = scalar_lea.vmem [#allocation8], %s2492_s10  ;;  %s2940_s13 = sld [smem:[#allocation37_spill]] }
  0xfe   : > { %1731 = dma.hbm_to_vmem [thread:$0]  (!%p2939_p6), %s2615_s30, 128, %s407_s21, %s396_s23  }
  0xff   : > { %s440_s20 = sshll.u32 %s433_s12, 4  ;;  %s2082_s5 = scalar_lea.hbm %s2639_s11, 16  ;;  %s441_s20 = int_to_ptr.vmem [resolvable:$true] %s440_s20 }
 0x100   : > { %p2083_p5 = scmp.ne.s32.totalorder %s2639_s11, %s2082_s5  ;;  %s2087_s23 = scalar_lea.hbm %s2873_s2, 32 }
 0x101   : > { %p2088_p10 = scmp.lt.u32.totalorder %s2639_s11, %s2873_s2  ;;  %p2089_p3 = scmp.lt.u32.totalorder %s2087_s23, %s2082_s5 }
 0x102   : > { %p2085_p0 = pnand %p2083_p5, %p2938_p8  ;;  %p2091_p4 = scmp.lt.u32.totalorder %s2082_s5, %s2639_s11 }
 0x103   : > { %s2941_s1 = smov %s2940_s13  ;;  %s2646_s15 = scalar_lea.hbm %s2940_s13, %s2500_s16 }
 0x104   : > { %p2086_p9 = pneg %p2085_p0  ;;  %p2090_p13 = por %p2089_p3, %p2088_p10 }
 0x106   : > { %p2092_p7 = por %p2091_p4, %p2090_p13 }
 0x108   : > { %p2093_p2 = pnand %p2092_p7, %p2086_p9 }
 0x10a   : > { %2096 = shalt.err (!%p2093_p2)
}
 0x10b   : > { %s2097_s16 = scalar_lea.vmem %s441_s20, 16  ;;  %s2260_s29 = smov [#allocation8]  }
 0x10c   : > { %p2098_p12 = scmp.ne.s32.totalorder %s441_s20, %s2097_s16  ;;  %s2102_s3 = sshll.u32 %s2260_s29, 4  ;;  %s2103_s3 = int_to_ptr.vmem [resolvable:$false] %s2102_s3 }
 0x10d   : > { %s2104_s12 = scalar_lea.vmem %s2103_s3, 32  ;;  %p2105_p5 = scmp.lt.s32.totalorder %s441_s20, %s2103_s3 }
 0x10e   : > { %p2100_p11 = pnand %p2098_p12, %p2938_p8  ;;  %p2106_p0 = scmp.lt.s32.totalorder %s2104_s12, %s2097_s16 }
 0x110   : > { %p2101_p1 = pneg %p2100_p11  ;;  %p2107_p6 = por %p2106_p0, %p2105_p5 }
 0x112   : > { %p2108_p3 = pnand %p2107_p6, %p2101_p1 }
 0x114   : > { %2111 = shalt.err (!%p2108_p3)
}
 0x115   : > { %p2942_p10 = scmp.ne.s32.totalorder %s2930_s25, 0  ;;  %s450_s28 = scalar_lea.vmem [#allocation9], %s2492_s10 }
 0x116   : > { %s457_s27 = sshll.u32 %s450_s28, 4  ;;  %s2943_s13 = sand.u32 1, %s2248_s18   ;;  %s458_s27 = int_to_ptr.vmem [resolvable:$true] %s457_s27 }
 0x117   : > { %1737 = dma.hbm_to_vmem [thread:$0]  (!%p2942_p10), %s2639_s11, 16, %s441_s20, %s2513_s4  }
 0x118   : > { %s448_s5 = scalar_lea.sflag [#allocation10], %s2943_s13  ;;  %s2112_s21 = scalar_lea.hbm %s2646_s15, 16 }
 0x119   : > { %p2113_p6 = scmp.ne.s32.totalorder %s2646_s15, %s2112_s21  ;;  %s2117_s22 = scalar_lea.hbm %s2941_s1, 32 }
 0x11a   : > { %p2118_p4 = scmp.lt.u32.totalorder %s2646_s15, %s2941_s1  ;;  %p2119_p7 = scmp.lt.u32.totalorder %s2117_s22, %s2112_s21 }
 0x11b   : > { %p2115_p9 = pnand %p2113_p6, %p2938_p8  ;;  %p2121_p12 = scmp.lt.u32.totalorder %s2112_s21, %s2646_s15 }
 0x11c   : > { %p2120_p2 = por %p2119_p7, %p2118_p4 }
 0x11d   : > { %p2116_p13 = pneg %p2115_p9 }
 0x11e   : > { %p2122_p11 = por %p2121_p12, %p2120_p2 }
 0x120   : > { %p2123_p1 = pnand %p2122_p11, %p2116_p13 }
 0x122   : > { %2126 = shalt.err (!%p2123_p1)
}
 0x123   : > { %s2127_s4 = scalar_lea.vmem %s458_s27, 16  ;;  %s2261_s10 = smov [#allocation9]  }
 0x124   : > { %p2128_p5 = scmp.ne.s32.totalorder %s458_s27, %s2127_s4  ;;  %s2132_s11 = sshll.u32 %s2261_s10, 4  ;;  %s2133_s11 = int_to_ptr.vmem [resolvable:$false] %s2132_s11 }
 0x125   : > { %s2134_s20 = scalar_lea.vmem %s2133_s11, 32  ;;  %p2135_p6 = scmp.lt.s32.totalorder %s458_s27, %s2133_s11 }
 0x126   : > { %p2130_p0 = pnand %p2128_p5, %p2938_p8  ;;  %p2136_p9 = scmp.lt.s32.totalorder %s2134_s20, %s2127_s4 }
 0x128   : > { %p2131_p3 = pneg %p2130_p0  ;;  %p2137_p10 = por %p2136_p9, %p2135_p6 }
 0x12a   : > { %p2138_p4 = pnand %p2137_p10, %p2131_p3 }
 0x12c   : > { %2141 = shalt.err (!%p2138_p4)
}
 0x12d   : > { %p2944_p7 = scmp.ne.s32.totalorder %s2930_s25, 0  ;;  %s2945_s29 = sld [smem:[#allocation32_spill]] }
 0x12f   : > { %1740 = dma.hbm_to_vmem [thread:$0]  (!%p2944_p7), %s2646_s15, 16, %s458_s27, %s448_s5  }
 0x133   : > { %p2946_p13 = scmp.ne.s32.totalorder %s2945_s29, 0 }
 0x134   : > { %s2689_s7 = sand.u32 (!%p2946_p13), 1, %s2232_s14   ;;  %p2947_p8 = scmp.ne.s32.totalorder (!%p2946_p13), %s2925_s24, 0 }
 0x135   : > { %466 = sbr.rel (%p2946_p13) target bundleno = 1968 (0x7b0), region = 60  ;;  %s1542_s3 = sshll.u32 (!%p2946_p13), %s2689_s7, 3 }
 0x136   : > { %s469_s12 = scalar_lea.sflag (!%p2946_p13), [#allocation4], %s2689_s7  ;;  %s472_s28 = scalar_lea.vmem (!%p2946_p13), [#allocation3], %s1542_s3 }
 0x13c   : > { %2195 = dma.done.wait (%p2947_p8), %s469_s12, 128  }
 0x13d   : > { %2197 = vsyncadd (%p2947_p8), %s469_s12, 4294967168  ;;  %s477_s25 = sand.u32 1, %s2361_s19   ;;  %s480_s27 = scalar_lea.vmem [#allocation6], %s2689_s7 }
 0x13e   : > { %s478_s15 = scalar_lea.sflag [#allocation7], %s477_s25 }
 0x13f   : > { %2199 = dma.done.wait (%p2947_p8), %s478_s15, 32  }
 0x140   : > { %2201 = vsyncadd (%p2947_p8), %s478_s15, 4294967264  ;;  %s488_s13 = scalar_lea.vmem [#allocation8], %s2689_s7  ;;  %s494_s5 = scalar_lea.sflag [#allocation10], %s477_s25 }
 0x141   : > { %s496_s21 = scalar_lea.vmem [#allocation9], %s2689_s7 }
 0x142   : > { %2203 = dma.done.wait (%p2947_p8), %s494_s5, 16  }
 0x143   : > { %2205 = vsyncadd (%p2947_p8), %s494_s5, 4294967280  ;;  %p2948_p10 = scmp.eq.s32.totalorder %s2361_s19, 0 }
 0x145   : > { %2207 = dma.done.wait (%p2948_p10), [#allocation10], 256   ;;  %p2949_p2 = pmov %p2948_p10 }
 0x147   : > { %2209 = vsyncadd (%p2949_p2), [#allocation10], 4294967040  ;;  %p2950_p12 = pmov %p2949_p2 }
 0x148   : > { %p2951_p11 = pmov %p2949_p2 }
 0x149   : > { %2211 = dma.done.wait (%p2950_p12), [#allocation13], 272  }
 0x14a   : > { %2213 = vsyncadd (%p2951_p11), [#allocation13], 4294967024  ;;  %p2952_p1 = pmov %p2949_p2 }
 0x14c   : > { %2215 = dma.done.wait (%p2952_p1), [#allocation16], 272   ;;  %p2953_p5 = pmov %p2952_p1 }
 0x14d   : > { %p2954_p0 = pmov %p2952_p1 }
 0x14e   : > { %2217 = vsyncadd (%p2953_p5), [#allocation16], 4294967024 }
 0x14f   : > { %2219 = dma.done.wait (%p2954_p0), [#allocation19], 16   ;;  %p2955_p3 = pmov %p2954_p0 }
 0x150   : > { %vm577_vm0 = vcmask 261120   ;;  %v2727_v0 = vld [vmem:[%s472_s28] sm:$0xff]  ;;  %v1829_v13 = vld [vmem:[#allocation11] sm:$0xff]   ;;  %v2262_v14 = vmov 0.0   ;;  %vm2263_vm1 = vmmov 0   ;;  %vm674_vm2 = vcmask 519168  }
 0x151   : > { %2221 = vsyncadd (%p2955_p3), [#allocation19], 4294967280  ;;  %v578_v1 = vsel %vm577_vm0, %v2727_v0, 0.0  ;;  %v1827_v12 = vld [vmem:[#allocation14] sm:$0xff]   ;;  %1603 = vmatprep.subr.bf16.mxu0 %v2262_v14  ;;  %1611 = vmatprep.subr.bf16.mxu1 %v2262_v14  ;;  %v1828_v15 = vld [vmem:[#allocation14 + $0x8] sm:$0xff]   ;;  %vm785_vm3 = vcmask 64512  }
 0x152   : > { %579 = vadd.xlane.f32.xlu0 %v578_v1  ;;  %1604 = vmatpush3.bf16.msra.mxu0 %v1827_v12  ;;  %v1830_v16 = vld [vmem:[#allocation11 + $0x8] sm:$0xff]   ;;  %v1576_v24 = vld [vmem:[%s488_s13] ss:$0 sm:$0xff]  ;;  %v1550_v35 = vld [vmem:[#allocation15] ss:$0 sm:$0xff]  ;;  %s2264_s19 = smov 120  }
 0x153   : > { %1612 = vmatpush3.bf16.msra.mxu1 %v1829_v13  ;;  %1605 = vmatprep.subr.bf16.mxu0 %v2262_v14  ;;  %v1577_v26 = vld [vmem:[%s496_s21] ss:$0 sm:$0xff]  ;;  %v1554_v40 = vld [vmem:[#allocation12] ss:$0 sm:$0xff]  ;;  %s2265_s24 = smov 112   ;;  %s2266_s30 = smov 104  }
 0x154   : > { %1607 = vmatprep.mubr.msk.bf16.mxu0 %vm2263_vm1, %v2262_v14  ;;  %1613 = vmatprep.subr.bf16.mxu1 %v2262_v14  ;;  %v1558_v62 = vld [vmem:[%s480_s27] ss:$0 sm:$0xff]  ;;  %s2267_s23 = smov 88   ;;  %s2268_s22 = smov 80   ;;  %vm850_vm4 = vcmask 1043456   ;;  %vm1243_vm5 = vcmask 130048  }
 0x155   : > { %1615 = vmatprep.mubr.msk.bf16.mxu1 %vm2263_vm1, %v2262_v14  ;;  %s2269_s6 = smov 72   ;;  %s2270_s16 = smov 96   ;;  %vm1246_vm6 = vcmask 195584  }
 0x156   : > { %681 = vadd.xlane.f32.xlu0 %v578_v1  ;;  %1606 = vmatpush3.bf16.msra.mxu0 %v1828_v15  ;;  %s2271_s4 = smov 8   ;;  %s2272_s10 = smov 16  }
 0x157   : > { %1619 = vmatprep.subr.bf16.mxu0 %v2262_v14  ;;  %1614 = vmatpush3.bf16.msra.mxu1 %v1830_v16  ;;  %s2273_s11 = smov 24   ;;  %s2956_s20 = sld [smem:[#allocation31_spill]] }
 0x158   : > { %1625 = vmatprep.subr.bf16.mxu1 %v2262_v14  ;;  %s568_s12 = scalar_lea.vmem [#allocation20], %s1542_s3  ;;  %s2957_s27 = sld [smem:[#allocation42_spill]] }
 0x159   : > { %s1331_s28 = sshll.u32 %s568_s12, 4  ;;  %s1317_s3 = scalar_lea.sflag [#allocation5], %s2689_s7  ;;  %s2823_s28 = int_to_ptr.vmem [resolvable:$true] %s1331_s28 }
 0x15a   : > { %s2142_s5 = scalar_lea.vmem %s2823_s28, 128  ;;  %p2958_p9 = scmp.ne.s32.totalorder %s2926_s26, 0 }
 0x15b   : > { %p2143_p6 = scmp.ne.s32.totalorder %s2823_s28, %s2142_s5  ;;  %s2274_s21 = smov [#allocation20]  }
 0x15d   : > { %s1573_s29 = sshll.u32 %s2956_s20, 7  ;;  %p2144_p4 = pnand %p2143_p6, %p2958_p9 }
 0x15e   : > { %s2821_s13 = scalar_lea.hbm %s2957_s27, %s1573_s29 }
 0x15f   : > { %p2145_p7 = pneg %p2144_p4 }
 0x1df   : > { %v580_v2 = vpop.xlane.xlu0 %579 }
 0x1e0   : > { %v582_v3 = vmul.f32 0.03125, %v580_v2 }
 0x1e2   : > { %v583_v4 = vsub.f32 %v2727_v0, %v582_v3 }
 0x1e3   : > { %v682_v5 = vpop.xlane.xlu0 %681 }
 0x1e4   : > { %v684_v6 = vmul.f32 0.03125, %v682_v5  ;;  %v584_v7 = vmul.f32 %v583_v4, %v583_v4 }
 0x1e6   : > { %v685_v8 = vsub.f32 %v2727_v0, %v684_v6  ;;  %v585_v9 = vsel %vm577_vm0, %v584_v7, 0.0 }
 0x1e7   : > { %586 = vadd.xlane.f32.xlu1 %v585_v9 }
 0x1e8   : > { %v686_v10 = vmul.f32 %v685_v8, %v685_v8 }
 0x1ea   : > { %v687_v11 = vsel %vm577_vm0, %v686_v10, 0.0 }
 0x1eb   : > { %688 = vadd.xlane.f32.xlu1 %v687_v11 }
 0x274   : > { %v587_v17 = vpop.xlane.xlu1 %586 }
 0x275   : > { %v588_v18 = vmul.f32 0.03125, %v587_v17 }
 0x277   : > { %v589_v19 = vadd.f32 1e-05, %v588_v18 }
 0x278   : > { %v689_v20 = vpop.xlane.xlu1 %688 }
 0x279   : > { %1834 = vrsqrt.f32 %v589_v19  ;;  %v690_v21 = vmul.f32 0.03125, %v689_v20 }
 0x27b   : > { %v691_v22 = vadd.f32 1e-05, %v690_v21 }
 0x27d   : > { %1836 = vrsqrt.f32 %v691_v22 }
 0x283   : > { %v1835_v23 = vpop.eup %1834 }
 0x284   : > { %v591_v25 = vmul.f32 %v1835_v23, %v583_v4 }
 0x286   : > { %v598_v27 = vmul.f32 %v1576_v24, %v591_v25 }
 0x287   : > { %v1837_v28 = vpop.eup %1836 }
 0x288   : > { %v605_v29 = vadd.f32 %v1577_v26, %v598_v27  ;;  %v693_v30 = vmul.f32 %v1837_v28, %v685_v8 }
 0x28a   : > { %v606_v31 = vpack.c.bf16 %v605_v29, %v605_v29  ;;  %v700_v32 = vmul.f32 %v1576_v24, %v693_v30 }
 0x28c   : > { %1608 = vmatmul.mubr.msk.bf16.vlgmr.msra.gmra.mrb[0].mxu0 %vm577_vm0, %v606_v31  ;;  %v707_v33 = vadd.f32 %v1577_v26, %v700_v32 }
 0x28d   : > { %1621 = vmatprep.mubr.msk.bf16.mxu0 %vm2263_vm1, %v2262_v14 }
 0x28e   : > { %v708_v34 = vpack.c.bf16 %v707_v33, %v707_v33 }
 0x290   : > { %1616 = vmatmul.mubr.msk.bf16.vlgmr.msra.gmra.mrb[0].mxu1 %vm577_vm0, %v708_v34 }
 0x291   : > { %1627 = vmatprep.mubr.msk.bf16.mxu1 %vm2263_vm1, %v2262_v14 }
 0x35f   : > { %v667_v36 = vpop.f32.mrb[0].mxu0 }
 0x360   : > { %v668_v37 = vadd.f32 %v1550_v35, %v667_v36  ;;  %v1609_v38 = vpop.f32.mrb[1].mxu0 }
 0x361   : > { %v670_v39 = vpop.f32.mrb[2].mxu0 }
 0x362   : > { %v673_v41 = vpack.c.bf16 %v668_v37, %v668_v37  ;;  %v1610_v42 = vpop.f32.mrb[3].mxu0 }
 0x363   : > { %v769_v43 = vpop.f32.mrb[0].mxu1 }
 0x364   : > { %675 = vst.msk [vmem:[#allocation2] sm:$0xf] %vm674_vm2, %v673_v41  ;;  %v770_v44 = vadd.f32 %v1554_v40, %v769_v43  ;;  %v1617_v45 = vpop.f32.mrb[1].mxu1 }
 0x365   : > { %v772_v46 = vpop.f32.mrb[2].mxu1 }
 0x366   : > { %v775_v47 = vmul.f32 0.35355338, %v770_v44  ;;  %v1618_v48 = vpop.f32.mrb[3].mxu1 }
 0x368   : > { %v776_v49 = vpack.c.bf16 %v775_v47, %v775_v47 }
 0x36a   : > { %898 = vrot.lane.b32.xlu1 %v776_v49, %s2264_s19 }
 0x36b   : > { %v777_v50 = vld [vmem:[#allocation2] sm:$0xf] }
 0x36c   : > { %v790_v51 = vsel %vm785_vm3, %v777_v50, 0  ;;  %v2756_v52 = vcombine.low %v777_v50, %v777_v50 }
 0x36d   : > { %1620 = vmatpush3.bf16.xpose.msra.mxu0 %v790_v51 }
 0x36e   : > { %1011 = vrot.lane.b32.xlu1 %v2756_v52, %s2265_s24  ;;  %900 = vrot.lane.b32.xlu0 %v2756_v52, %s2264_s19  ;;  %s2146_s19 = sshll.u32 %s2274_s21, 4  ;;  %s2147_s19 = int_to_ptr.vmem [resolvable:$false] %s2146_s19 }
 0x36f   : > { %1631 = vmatprep.subr.bf16.mxu0 %v2262_v14  ;;  %p2149_p13 = scmp.lt.s32.totalorder %s2823_s28, %s2147_s19 }
 0x372   : > { %1009 = vrot.lane.b32.xlu1 %v776_v49, %s2265_s24  ;;  %1122 = vrot.lane.b32.xlu0 %v2756_v52, %s2266_s30  ;;  %s2148_s24 = scalar_lea.vmem %s2147_s19, 256 }
 0x373   : > { %p2150_p8 = scmp.lt.s32.totalorder %s2148_s24, %s2142_s5 }
 0x374   : > { %1622 = vmatmul.mubr.msk.bf16.vlgmr.msra.gmra.mrb[4].mxu0 %vm785_vm3, %v776_v49 }
 0x375   : > { %1633 = vmatprep.mubr.msk.bf16.mxu0 %vm2263_vm1, %v2262_v14  ;;  %p2151_p10 = por %p2150_p8, %p2149_p13 }
 0x376   : > { %1120 = vrot.lane.b32.xlu1 %v776_v49, %s2266_s30 }
 0x377   : > { %p2152_p2 = pnand %p2151_p10, %p2145_p7 }
 0x3dc   : > { %v899_v53 = vpop.permute.xlu1 %898 }
 0x3e0   : > { %v901_v54 = vpop.permute.xlu0 %900  ;;  %v1012_v56 = vpop.permute.xlu1 %1011 }
 0x3e1   : > { %v906_v55 = vsel %vm785_vm3, %v901_v54, 0  ;;  %v1017_v57 = vsel %vm785_vm3, %v1012_v56, 0 }
 0x3e2   : > { %1632 = vmatpush3.bf16.xpose.msra.mxu0 %v906_v55 }
 0x3e3   : > { %1643 = vmatprep.subr.bf16.mxu0 %v2262_v14 }
 0x3e4   : > { %v1123_v58 = vpop.permute.xlu0 %1122  ;;  %v1010_v59 = vpop.permute.xlu1 %1009 }
 0x3e5   : > { %v1128_v60 = vsel %vm785_vm3, %v1123_v58, 0 }
 0x3e8   : > { %v1121_v61 = vpop.permute.xlu1 %1120 }
 0x3e9   : > { %1634 = vmatmul.mubr.msk.bf16.vlgmr.msra.gmra.mrb[8].mxu0 %vm785_vm3, %v899_v53 }
 0x3ea   : > { %1644 = vmatpush3.bf16.xpose.msra.mxu0 %v1017_v57  ;;  %1645 = vmatprep.mubr.msk.bf16.mxu0 %vm2263_vm1, %v2262_v14 }
 0x3eb   : > { %1655 = vmatprep.subr.bf16.mxu0 %v2262_v14 }
 0x3f1   : > { %1646 = vmatmul.mubr.msk.bf16.vlgmr.msra.gmra.mrb[12].mxu0 %vm785_vm3, %v1010_v59 }
 0x3f2   : > { %1656 = vmatpush3.bf16.xpose.msra.mxu0 %v1128_v60  ;;  %1657 = vmatprep.mubr.msk.bf16.mxu0 %vm2263_vm1, %v2262_v14 }
 0x3f3   : > { %1667 = vmatprep.subr.bf16.mxu0 %v2262_v14 }
 0x3f9   : > { %1658 = vmatmul.mubr.msk.bf16.vlgmr.msra.gmra.mrb[16].mxu0 %vm785_vm3, %v1121_v61 }
 0x3fa   : > { %1671 = vmatprep.mubr.msk.bf16.mxu0 %vm2263_vm1, %v2262_v14 }
 0x447   : > { %v826_v63 = vpop.f32.mrb[4].mxu0 }
 0x448   : > { %v827_v1 = vadd.f32 %v1558_v62, %v826_v63  ;;  %v1623_v2 = vpop.f32.mrb[5].mxu0 }
 0x449   : > { %v829_v3 = vpop.f32.mrb[6].mxu0  ;;  %v1832_v2 = vld [vmem:[#allocation17] sm:$0xff]  }
 0x44a   : > { %v1624_v4 = vpop.f32.mrb[7].mxu0  ;;  %v832_v5 = vsel %vm785_vm3, %v827_v1, -inf  ;;  %1668 = vmatpush3.bf16.msra.mxu0 %v1832_v2 }
 0x44b   : > { %833 = vmax.xlane.f32.xlu0 %v832_v5  ;;  %1669 = vmatprep.subr.bf16.mxu0 %v2262_v14 }
 0x4bc   : > { %v942_v6 = vpop.f32.mrb[8].mxu0 }
 0x4bd   : > { %v943_v7 = vadd.f32 %v1558_v62, %v942_v6  ;;  %v1635_v8 = vpop.f32.mrb[9].mxu0  ;;  %v1833_v6 = vld [vmem:[#allocation17 + $0x8] sm:$0xff]  }
 0x4be   : > { %v945_v9 = vpop.f32.mrb[10].mxu0  ;;  %1670 = vmatpush3.bf16.msra.mxu0 %v1833_v6 }
 0x4bf   : > { %v1636_v10 = vpop.f32.mrb[11].mxu0  ;;  %v948_v11 = vsel %vm785_vm3, %v943_v7, -inf }
 0x4c0   : > { %949 = vmax.xlane.f32.xlu1 %v948_v11 }
 0x4c4   : > { %v1053_v12 = vpop.f32.mrb[12].mxu0 }
 0x4c5   : > { %v1054_v13 = vadd.f32 %v1558_v62, %v1053_v12  ;;  %v1647_v15 = vpop.f32.mrb[13].mxu0 }
 0x4c6   : > { %v1056_v16 = vpop.f32.mrb[14].mxu0 }
 0x4c7   : > { %v1648_v17 = vpop.f32.mrb[15].mxu0  ;;  %v1059_v18 = vsel %vm785_vm3, %v1054_v13, -inf }
 0x4c8   : > { %1060 = vmax.xlane.f32.xlu0 %v1059_v18 }
 0x4cc   : > { %v1164_v19 = vpop.f32.mrb[16].mxu0 }
 0x4cd   : > { %v1165_v20 = vadd.f32 %v1558_v62, %v1164_v19  ;;  %v1659_v21 = vpop.f32.mrb[17].mxu0 }
 0x4ce   : > { %v1167_v22 = vpop.f32.mrb[18].mxu0 }
 0x4cf   : > { %v1660_v23 = vpop.f32.mrb[19].mxu0  ;;  %v1170_v24 = vsel %vm785_vm3, %v1165_v20, -inf }
 0x4d0   : > { %1171 = vmax.xlane.f32.xlu0 %v1170_v24 }
 0x4d1   : > { %958 = vrot.lane.b32.xlu1 %v2756_v52, %s2267_s23 }
 0x4d5   : > { %1069 = vrot.lane.b32.xlu1 %v2756_v52, %s2268_s22 }
 0x4d8   : > { %v834_v25 = vpop.xlane.xlu0 %833 }
 0x4d9   : > { %1180 = vrot.lane.b32.xlu1 %v2756_v52, %s2269_s6  ;;  %v835_v28 = vsub.f32 %v827_v1, %v834_v25 }
 0x4db   : > { %v836_v30 = vmul.f32 1.442695, %v835_v28 }
 0x4e6   : > { %845 = vrot.lane.b32.xlu0 %v2756_v52, %s2270_s16 }
 0x54d   : > { %v950_v26 = vpop.xlane.xlu1 %949 }
 0x54e   : > { %v951_v27 = vsub.f32 %v943_v7, %v950_v26 }
 0x550   : > { %v952_v29 = vmul.f32 1.442695, %v951_v27 }
 0x551   : > { %v959_v42 = vpop.permute.xlu1 %958 }
 0x552   : > { %1838 = vpow2.f32 %v952_v29  ;;  %v964_v46 = vsel %vm850_vm4, %v959_v42, 0 }
 0x553   : > { %1840 = vpow2.f32 %v836_v30 }
 0x555   : > { %v1061_v31 = vpop.xlane.xlu0 %1060  ;;  %v1070_v47 = vpop.permute.xlu1 %1069 }
 0x556   : > { %v1062_v32 = vsub.f32 %v1054_v13, %v1061_v31  ;;  %v1075_v51 = vsel %vm850_vm4, %v1070_v47, 0 }
 0x558   : > { %v1063_v33 = vmul.f32 1.442695, %v1062_v32 }
 0x559   : > { %v1181_v53 = vpop.permute.xlu1 %1180 }
 0x55a   : > { %1842 = vpow2.f32 %v1063_v33  ;;  %v1186_v55 = vsel %vm850_vm4, %v1181_v53, 0 }
 0x55c   : > { %v1839_v34 = vpop.eup %1838 }
 0x55d   : > { %v1172_v35 = vpop.xlane.xlu0 %1171  ;;  %v954_v36 = vsel %vm785_vm3, %v1839_v34, 0.0  ;;  %v1841_v39 = vpop.eup %1840  ;;  %v957_v49 = vpack.c.bf16 %v1839_v34, %v1839_v34  ;;  %v1568_v34 = vld [vmem:[#allocation18] ss:$0 sm:$0xff] }
 0x55e   : > { %v1173_v37 = vsub.f32 %v1165_v20, %v1172_v35  ;;  %955 = vadd.xlane.f32.xlu0 %v954_v36  ;;  %v841_v44 = vpack.c.bf16 %v1841_v39, %v1841_v39  ;;  %v838_v52 = vsel %vm785_vm3, %v1841_v39, 0.0 }
 0x560   : > { %v1174_v38 = vmul.f32 1.442695, %v1173_v37 }
 0x561   : > { %v846_v40 = vpop.permute.xlu0 %845 }
 0x562   : > { %1844 = vpow2.f32 %v1174_v38  ;;  %v852_v41 = vsel %vm850_vm4, %v846_v40, 0 }
 0x563   : > { %1626 = vmatpush3.bf16.msra.mxu1 %v852_v41 }
 0x564   : > { %v1843_v43 = vpop.eup %1842  ;;  %1637 = vmatprep.subr.bf16.mxu1 %v2262_v14 }
 0x565   : > { %v1065_v45 = vsel %vm785_vm3, %v1843_v43, 0.0  ;;  %v1068_v54 = vpack.c.bf16 %v1843_v43, %v1843_v43 }
 0x566   : > { %1066 = vadd.xlane.f32.xlu1 %v1065_v45  ;;  %1628 = vmatmul.mubr.msk.bf16.vlgmr.msra.gmra.mrb[4].mxu1 %vm785_vm3, %v841_v44 }
 0x567   : > { %1638 = vmatpush3.bf16.msra.mxu1 %v964_v46  ;;  %1639 = vmatprep.mubr.msk.bf16.mxu1 %vm2263_vm1, %v2262_v14 }
 0x568   : > { %1649 = vmatprep.subr.bf16.mxu1 %v2262_v14 }
 0x56c   : > { %v1845_v48 = vpop.eup %1844 }
 0x56d   : > { %v1176_v50 = vsel %vm785_vm3, %v1845_v48, 0.0  ;;  %v1179_v56 = vpack.c.bf16 %v1845_v48, %v1845_v48 }
 0x56e   : > { %1177 = vadd.xlane.f32.xlu0 %v1176_v50  ;;  %1640 = vmatmul.mubr.msk.bf16.vlgmr.msra.gmra.mrb[8].mxu1 %vm785_vm3, %v957_v49 }
 0x56f   : > { %1650 = vmatpush3.bf16.msra.mxu1 %v1075_v51  ;;  %1651 = vmatprep.mubr.msk.bf16.mxu1 %vm2263_vm1, %v2262_v14 }
 0x570   : > { %1661 = vmatprep.subr.bf16.mxu1 %v2262_v14 }
 0x572   : > { %839 = vadd.xlane.f32.xlu0 %v838_v52 }
 0x576   : > { %1652 = vmatmul.mubr.msk.bf16.vlgmr.msra.gmra.mrb[12].mxu1 %vm785_vm3, %v1068_v54 }
 0x577   : > { %1662 = vmatpush3.bf16.msra.mxu1 %v1186_v55  ;;  %1663 = vmatprep.mubr.msk.bf16.mxu1 %vm2263_vm1, %v2262_v14 }
 0x57e   : > { %1664 = vmatmul.mubr.msk.bf16.vlgmr.msra.gmra.mrb[16].mxu1 %vm785_vm3, %v1179_v56 }
 0x5eb   : > { %v956_v57 = vpop.xlane.xlu0 %955 }
 0x5ec   : > { %1846 = vrcp.f32 %v956_v57 }
 0x5f3   : > { %v1067_v61 = vpop.xlane.xlu1 %1066 }
 0x5f4   : > { %1848 = vrcp.f32 %v1067_v61 }
 0x5f6   : > { %v1847_v63 = vpop.eup %1846 }
 0x5fb   : > { %v1178_v7 = vpop.xlane.xlu0 %1177 }
 0x5fc   : > { %1850 = vrcp.f32 %v1178_v7 }
 0x5fe   : > { %v1849_v10 = vpop.eup %1848 }
 0x5ff   : > { %v840_v24 = vpop.xlane.xlu0 %839 }
 0x600   : > { %1852 = vrcp.f32 %v840_v24 }
 0x606   : > { %v1851_v18 = vpop.eup %1850 }
 0x60a   : > { %v1853_v25 = vpop.eup %1852 }
 0x639   : > { %v888_v58 = vpop.f32.mrb[4].mxu1 }
 0x63a   : > { %v1629_v59 = vpop.f32.mrb[5].mxu1  ;;  %v895_v26 = vmul.f32 %v1853_v25, %v888_v58 }
 0x63b   : > { %v891_v60 = vpop.f32.mrb[6].mxu1 }
 0x63c   : > { %v1630_v62 = vpop.f32.mrb[7].mxu1  ;;  %v896_v29 = vpack.c.bf16 %v895_v26, %v895_v26 }
 0x641   : > { %v1000_v1 = vpop.f32.mrb[8].mxu1 }
 0x642   : > { %v1007_v3 = vmul.f32 %v1847_v63, %v1000_v1  ;;  %v1641_v4 = vpop.f32.mrb[9].mxu1 }
 0x643   : > { %v1003_v5 = vpop.f32.mrb[10].mxu1 }
 0x644   : > { %v1008_v8 = vpack.c.bf16 %v1007_v3, %v1007_v3  ;;  %v1642_v9 = vpop.f32.mrb[11].mxu1 }
 0x646   : > { %1232 = vrot.lane.b32.xlu0 %v1008_v8, %s2271_s4 }
 0x649   : > { %v1111_v11 = vpop.f32.mrb[12].mxu1 }
 0x64a   : > { %v1118_v12 = vmul.f32 %v1849_v10, %v1111_v11  ;;  %v1653_v13 = vpop.f32.mrb[13].mxu1 }
 0x64b   : > { %v1114_v15 = vpop.f32.mrb[14].mxu1 }
 0x64c   : > { %v1119_v16 = vpack.c.bf16 %v1118_v12, %v1118_v12  ;;  %v1654_v17 = vpop.f32.mrb[15].mxu1 }
 0x64e   : > { %1235 = vrot.lane.b32.xlu1 %v1119_v16, %s2272_s10 }
 0x651   : > { %v1222_v19 = vpop.f32.mrb[16].mxu1 }
 0x652   : > { %v1229_v20 = vmul.f32 %v1851_v18, %v1222_v19  ;;  %v1665_v21 = vpop.f32.mrb[17].mxu1 }
 0x653   : > { %v1225_v22 = vpop.f32.mrb[18].mxu1 }
 0x654   : > { %v1230_v23 = vpack.c.bf16 %v1229_v20, %v1229_v20  ;;  %v1666_v14 = vpop.f32.mrb[19].mxu1 }
 0x656   : > { %1238 = vrot.lane.b32.xlu1 %v1230_v23, %s2273_s11 }
 0x6b8   : > { %v1233_v27 = vpop.permute.xlu0 %1232 }
 0x6b9   : > { %v1242_v30 = vsel %vm785_vm3, %v896_v29, %v1233_v27 }
 0x6c0   : > { %v1236_v28 = vpop.permute.xlu1 %1235 }
 0x6c1   : > { %v1245_v31 = vsel %vm1243_vm5, %v1242_v30, %v1236_v28 }
 0x6c8   : > { %v1239_v32 = vpop.permute.xlu1 %1238 }
 0x6c9   : > { %v1248_v33 = vsel %vm1246_vm6, %v1245_v31, %v1239_v32 }
 0x6ca   : > { %1672 = vmatmul.mubr.msk.bf16.vlgmr.msra.gmra.mrb[20].mxu0 %vm577_vm0, %v1248_v33 }
 0x79d   : > { %v1308_v35 = vpop.f32.mrb[20].mxu0 }
 0x79e   : > { %v1309_v36 = vadd.f32 %v1568_v34, %v1308_v35  ;;  %v1673_v37 = vpop.f32.mrb[21].mxu0 }
 0x79f   : > { %v1311_v38 = vpop.f32.mrb[22].mxu0 }
 0x7a0   : > { %v1314_v39 = vadd.f32 %v1309_v36, %v2727_v0  ;;  %v1674_v40 = vpop.f32.mrb[23].mxu0 }
 0x7a2   : > { %1315 = vst.msk [vmem:[%s568_s12] sm:$0xff] %vm577_vm0, %v1314_v39 }
 0x7a3   : > { %2155 = shalt.err (!%p2152_p2)
}
 0x7a4   : > { %s2156_s7 = scalar_lea.hbm %s2821_s13, 128  ;;  %s2160_s22 = scalar_lea.hbm %s2957_s27, 256 }
 0x7a5   : > { %p2157_p12 = scmp.ne.s32.totalorder %s2821_s13, %s2156_s7  ;;  %p2161_p5 = scmp.lt.u32.totalorder %s2821_s13, %s2957_s27 }
 0x7a6   : > { %p2162_p0 = scmp.lt.u32.totalorder %s2160_s22, %s2156_s7  ;;  %p2164_p6 = scmp.lt.u32.totalorder %s2156_s7, %s2821_s13 }
 0x7a7   : > { %p2158_p11 = pnand %p2157_p12, %p2958_p9 }
 0x7a8   : > { %p2163_p3 = por %p2162_p0, %p2161_p5 }
 0x7a9   : > { %p2159_p1 = pneg %p2158_p11 }
 0x7aa   : > { %p2165_p4 = por %p2164_p6, %p2163_p3 }
 0x7ac   : > { %p2166_p7 = pnand %p2165_p4, %p2159_p1 }
 0x7ae   : > { %2169 = shalt.err (!%p2166_p7)
}
 0x7af   : > { %1707 = dma.vmem_to_hbm [thread:$0]  (%p2958_p9), %s2823_s28, 128, %s2821_s13, %s1317_s3  }
 0x7b0 PF: > { %s2959_s4 = sld [smem:[#allocation29_spill]]  ;;  %s2960_s10 = sld [smem:[#allocation35_spill]] }
 0x7b1   : > { %p2962_p8 = scmp.ge.s32.totalorder %s2248_s18, 2 }
 0x7b6   : > { %s1343_s11 = sand.u32 1, %s2959_s4   ;;  %p2961_p13 = scmp.ne.s32.totalorder %s2960_s10, 0 }
 0x7b7   : > { %s1344_s20 = scalar_lea.sflag [#allocation5], %s1343_s11 }
 0x7b8   : > { %p1742_p10 = pnand %p2962_p8, %p2961_p13 }
 0x7ba   : > { %2223 = dma.done.wait (!%p1742_p10), %s1344_s20, 128  }
 0x7bb   : > { %2225 = vsyncadd (!%p1742_p10), %s1344_s20, 4294967168  ;;  %s35_s18 = sadd.s32 1, %s2248_s18   ;;  %s2963_s29 = sld [smem:[#allocation30_spill]] }
 0x7bc   : > { %p32_p2 = scmp.ge.s32.totalorder %s35_s18, 4   ;;  %s2964_s15 = sld [smem:[#allocation34_spill]] }
 0x7bd   : > { %s2965_s26 = sld [smem:[#allocation33_spill]]  ;;  %s2966_s13 = smov %s2232_s14 }
 0x7be   : > { %s2968_s16 = smov %s2244_s17  ;;  %34 = sbr.rel (!%p32_p2) target bundleno = 21 (0x15), region = 171 }
 0x7c1   : > { %s2967_s14 = smov %s2963_s29 }
 0x7c3   : > { %s2969_s17 = smov %s2965_s26 }
 0x7c5   :  { %1349 = vsyncpa [#allocation4], 1 }
 0x7c6   :  { %1351 = vsyncpa [#allocation4 + $0x1], 1 }
 0x7c7   :  { %1352 = vsyncpa [#allocation7], 1 }
 0x7c8   :  { %1354 = vsyncpa [#allocation7 + $0x1], 1 }
 0x7c9   :  { %1355 = vsyncpa [#allocation10], 1 }
 0x7ca   :  { %1357 = vsyncpa [#allocation10 + $0x1], 1 }
 0x7cb   :  { %1358 = vsyncpa [#allocation13], 1 }
 0x7cc   :  { %1359 = vsyncpa [#allocation16], 1 }
 0x7cd   :  { %1360 = vsyncpa [#allocation19], 1 }
 0x7ce   :  { %1361 = vsyncpa [#allocation5], 1 }
 0x7cf   :  { %1363 = vsyncpa [#allocation5 + $0x1], 1 }

</bundles_post_ra>
